<compile_context>
chip_gen: v7x
topology: tpu7x:2x2x1
jax: 0.10.0
libtpu: 0.0.40
codegen_flags: <defaults>
</compile_context>

<pallas_src>
from functools import partial

import jax
import jax.numpy as jnp
from jax import lax
from jax.experimental import pallas as pl
from jax.experimental.pallas import tpu as pltpu


def _qnet_lstm_kernel(
    state_ref, action_ref, last_action_ref, h0_ref, c0_ref,
    w1s_ref, w1a_ref, b1_ref,
    w2s_ref, w2a_ref, b2_ref,
    wih_ref, whh_ref, blstm_ref,
    w3f_ref, w3l_ref, b3_ref,
    w4_ref, b4_ref,
    q_ref, hout_ref, cout_ref,
    gx_ref, hs_ref, pre3_ref,
):
    """QNetworkLSTM forward for one batch tile.

    state_ref:  (bt, T, S)   action_ref/last_action_ref: (bt, T, A)   (batch-major)
    h0_ref/c0_ref: (bt, H)
    w1s/w2s: (S, H)  w1a/w2a: (A, H)  b1/b2: (1, H)          [matmul weights may be bf16]
    wih/whh: (H, 4H) blstm: (1, 4H)   (PyTorch gate order i, f, g, o; b_ih+b_hh folded)
    w3f/w3l: (H, H)  b3: (1, H)       w4: (1, H)  b4: (1, 1)
    q_ref: (bt, T)   hout_ref/cout_ref: (bt, H)
    gx_ref: (T, bt, 4H) scratch   hs_ref: (T, bt, H) scratch   pre3_ref: (bt*T, H) scratch
    """
    f32 = jnp.float32
    bt, seq_len, sdim = state_ref.shape
    adim = action_ref.shape[-1]
    hidden = whh_ref.shape[0]
    n_rows = bt * seq_len
    mm = w1s_ref.dtype            # MXU input dtype (bf16 or f32)

    # ---- Batched, time-independent projections: one matmul per weight, M = bt*T ----
    s_bm = state_ref[...].reshape(n_rows, sdim)
    a_bm = action_ref[...].reshape(n_rows, adim)
    la_bm = last_action_ref[...].reshape(n_rows, adim)

    # fc_branch = relu(linear1([state, action]))  (concat folded into split weights;
    # on v7x the two dots accumulate in the MRB).
    fc = jnp.maximum(
        jnp.dot(s_bm, w1s_ref[...], preferred_element_type=f32)
        + jnp.dot(a_bm, w1a_ref[...], preferred_element_type=f32)
        + b1_ref[...], 0.0)                                          # (bt*T, H) f32

    # lstm_branch input = relu(linear2([state, last_action]))
    xl = jnp.maximum(
        jnp.dot(s_bm, w2s_ref[...], preferred_element_type=f32)
        + jnp.dot(la_bm, w2a_ref[...], preferred_element_type=f32)
        + b2_ref[...], 0.0)                                          # (bt*T, H) f32

    # Input half of all LSTM gates for every timestep, with b_ih + b_hh prefolded.
    gx_bm = (jnp.dot(xl.astype(mm), wih_ref[...], preferred_element_type=f32)
             + blstm_ref[...])                                       # (bt*T, 4H) f32
    # One lane-dense (4H-wide) in-VMEM relayout to time-major so the recurrence
    # reads contiguous (bt, 4H) tiles with a cheap leading-dim dynamic index.
    gx_ref[...] = jnp.transpose(gx_bm.reshape(bt, seq_len, 4 * hidden), (1, 0, 2))

    # The fc half of linear3 is also time-independent: hoist it out of the loop.
    pre3_ref[...] = (jnp.dot(fc.astype(mm), w3f_ref[...], preferred_element_type=f32)
                     + b3_ref[...])                                  # (bt*T, H) f32

    # ---- Serial LSTM recurrence: only h @ Whh + gate nonlinearities remain ----
    whh = whh_ref[...]            # (H, 4H) f32, reused every step

    def sigmoid(x):
        # 0.5*tanh(0.5x)+0.5: one EUP op instead of a VALU divide on the critical path.
        return 0.5 * jnp.tanh(0.5 * x) + 0.5

    def step(t, carry):
        h, c = carry
        gates = gx_ref[t] + jnp.dot(h, whh, preferred_element_type=f32)   # (bt, 4H)
        # NOTE: gate slices are lane-aligned (free) when hidden_dim % 128 == 0;
        # pad hidden_dim to a multiple of 128 for production shapes.
        i_g = sigmoid(gates[:, 0 * hidden:1 * hidden])
        f_g = sigmoid(gates[:, 1 * hidden:2 * hidden])
        g_g = jnp.tanh(gates[:, 2 * hidden:3 * hidden])
        o_g = sigmoid(gates[:, 3 * hidden:4 * hidden])
        c_new = f_g * c + i_g * g_g
        h_new = o_g * jnp.tanh(c_new)
        hs_ref[t] = h_new                                            # dense (bt, H) write
        return (h_new, c_new)

    h_n, c_n = lax.fori_loop(0, seq_len, step, (h0_ref[...], c0_ref[...]),
                             unroll=min(8, seq_len))
    hout_ref[...] = h_n
    cout_ref[...] = c_n

    # ---- Batched epilogue: lstm half of linear3 + linear4 for all timesteps ----
    hs_bm = jnp.transpose(hs_ref[...], (1, 0, 2)).reshape(n_rows, hidden)  # batch-major
    merged = jnp.maximum(
        pre3_ref[...]
        + jnp.dot(hs_bm.astype(mm), w3l_ref[...], preferred_element_type=f32),
        0.0)                                                         # (bt*T, H) f32
    # linear4 (output width 1): row-wise multiply + lane reduce; emit one lane-dense
    # (bt, T) slab instead of T masked (bt, 1) stores.
    q = jnp.sum(merged.reshape(bt, seq_len, hidden) * w4_ref[...], axis=-1)
    q_ref[...] = q + b4_ref[...]                                     # (bt, T)


def _full_spec(arr):
    nd = arr.ndim
    return pl.BlockSpec(arr.shape, lambda i, _nd=nd: (0,) * _nd)


@partial(jax.jit, static_argnames=("b_tile",))
def _qnet_lstm_forward(kernel_params, state, action, last_action, hidden_in,
                       b_tile=None):
    """state/action/last_action: (B, T, .); hidden_in: (h0, c0) each (1, B, H)."""
    h0, c0 = hidden_in
    f32 = jnp.float32
    kp = kernel_params
    B, T, S = state.shape
    A = action.shape[-1]
    H = kp["whh"].shape[0]
    mm = kp["w1s"].dtype

    bt = B if b_tile is None else int(b_tile)
    # Batch tiles other than the full batch must be sublane-aligned (multiple of 8).
    assert B % bt == 0 and (bt == B or bt % 8 == 0), (B, bt)

    # No (B,T,.)->(T,B,.) transposes here: the kernel consumes batch-major inputs.
    s = state.astype(mm)
    a = action.astype(mm)
    la = last_action.astype(mm)
    h0b = h0[0].astype(f32)
    c0b = c0[0].astype(f32)

    args = (s, a, la, h0b, c0b,
            kp["w1s"], kp["w1a"], kp["b1"],
            kp["w2s"], kp["w2a"], kp["b2"],
            kp["wih"], kp["whh"], kp["blstm"],
            kp["w3f"], kp["w3l"], kp["b3"],
            kp["w4"], kp["b4"])

    in_specs = [
        pl.BlockSpec((bt, T, S), lambda i: (i, 0, 0)),
        pl.BlockSpec((bt, T, A), lambda i: (i, 0, 0)),
        pl.BlockSpec((bt, T, A), lambda i: (i, 0, 0)),
        pl.BlockSpec((bt, H), lambda i: (i, 0)),
        pl.BlockSpec((bt, H), lambda i: (i, 0)),
    ] + [_full_spec(w) for w in args[5:]]

    out_specs = (
        pl.BlockSpec((bt, T), lambda i: (i, 0)),
        pl.BlockSpec((bt, H), lambda i: (i, 0)),
        pl.BlockSpec((bt, H), lambda i: (i, 0)),
    )
    out_shape = (
        jax.ShapeDtypeStruct((B, T), f32),
        jax.ShapeDtypeStruct((B, H), f32),
        jax.ShapeDtypeStruct((B, H), f32),
    )
    scratch_shapes = [
        pltpu.VMEM((T, bt, 4 * H), f32),   # gx: input half of gates, time-major
        pltpu.VMEM((T, bt, H), f32),       # hs: per-step hidden states
        pltpu.VMEM((bt * T, H), f32),      # pre3: fc @ W3f + b3
    ]

    # Advisory cost / VMEM budget (scales with shapes; capped for v7x's 64 MiB).
    itemsz = jnp.dtype(mm).itemsize
    est_bytes = int(sum(int(x.size) * x.dtype.itemsize for x in args)
                    + 4 * (B * T + 2 * B * H)                 # outputs
                    + 4 * (T * bt * 4 * H + T * bt * H + bt * T * H))  # scratch
    flops = int(2 * B * T * (2 * (S + A) * H + 10 * H * H + H))
    transcendentals = int(B * T * 5 * H)
    vmem_limit = int(min(64 * 1024 * 1024, max(32 * 1024 * 1024, 8 * est_bytes)))

    q, h_n, c_n = pl.pallas_call(
        _qnet_lstm_kernel,
        grid=(B // bt,),
        in_specs=in_specs,
        out_specs=out_specs,
        out_shape=out_shape,
        scratch_shapes=scratch_shapes,
        compiler_params=pltpu.CompilerParams(
            dimension_semantics=("parallel",),     # batch tiles are independent
            vmem_limit_bytes=vmem_limit),
        cost_estimate=pl.CostEstimate(flops=flops, transcendentals=transcendentals,
                                      bytes_accessed=est_bytes),
    )(*args)

    # Trailing size-1 dim and hidden layout restored outside the kernel.
    return q[..., None], (h_n[None, :, :], c_n[None, :, :])


def _make_kernel_params(params, state_dim, action_dim, hidden_dim, matmul_dtype):
    """One-time weight prep: split concat-consuming weights, transpose, fold biases."""
    f32 = jnp.float32
    S, H = state_dim, hidden_dim
    w1 = params["w1"].astype(f32)                  # (H, S+A)
    w2 = params["w2"].astype(f32)
    w3 = params["w3"].astype(f32)                  # (H, 2H)
    return {
        "w1s": jnp.transpose(w1[:, :S]).astype(matmul_dtype),        # (S, H)
        "w1a": jnp.transpose(w1[:, S:]).astype(matmul_dtype),        # (A, H)
        "b1": params["b1"].astype(f32)[None, :],                      # (1, H)
        "w2s": jnp.transpose(w2[:, :S]).astype(matmul_dtype),
        "w2a": jnp.transpose(w2[:, S:]).astype(matmul_dtype),
        "b2": params["b2"].astype(f32)[None, :],
        "wih": jnp.transpose(params["w_ih"].astype(f32)).astype(matmul_dtype),  # (H, 4H)
        "whh": jnp.transpose(params["w_hh"].astype(f32)),             # (H, 4H) f32 (in-loop)
        "blstm": (params["b_ih"] + params["b_hh"]).astype(f32)[None, :],  # (1, 4H)
        "w3f": jnp.transpose(w3[:, :H]).astype(matmul_dtype),         # (H, H)
        "w3l": jnp.transpose(w3[:, H:]).astype(matmul_dtype),         # (H, H)
        "b3": params["b3"].astype(f32)[None, :],
        "w4": params["w4"].astype(f32),                               # (1, H), VPU multiply
        "b4": params["b4"].astype(f32)[None, :],                      # (1, 1)
    }


def _forward_ref(params, state, action, last_action, hidden_in):
    """Pure-JAX reference of the PyTorch forward (for correctness check)."""
    h0, c0 = hidden_in
    s = jnp.transpose(state, (1, 0, 2))
    a = jnp.transpose(action, (1, 0, 2))
    la = jnp.transpose(last_action, (1, 0, 2))
    fc = jnp.maximum(
        jnp.einsum("tbi,hi->tbh", jnp.concatenate([s, a], -1), params["w1"])
        + params["b1"], 0.0)
    xl = jnp.maximum(
        jnp.einsum("tbi,hi->tbh", jnp.concatenate([s, la], -1), params["w2"])
        + params["b2"], 0.0)

    def step(carry, x_t):
        h, c = carry
        gates = (x_t @ params["w_ih"].T + params["b_ih"]
                 + h @ params["w_hh"].T + params["b_hh"])
        i_g, f_g, g_g, o_g = jnp.split(gates, 4, axis=-1)
        c_new = jax.nn.sigmoid(f_g) * c + jax.nn.sigmoid(i_g) * jnp.tanh(g_g)
        h_new = jax.nn.sigmoid(o_g) * jnp.tanh(c_new)
        return (h_new, c_new), h_new

    (h_n, c_n), hs = lax.scan(step, (h0[0], c0[0]), xl)
    merged = jnp.concatenate([fc, hs], -1)
    x = jnp.maximum(jnp.einsum("tbm,hm->tbh", merged, params["w3"]) + params["b3"], 0.0)
    x = jnp.einsum("tbh,oh->tbo", x, params["w4"]) + params["b4"]
    return jnp.transpose(x, (1, 0, 2)), (h_n[None], c_n[None])


class QNetworkLSTM:
    """Q network with LSTM structure (Pallas/TPU version of the PyTorch module)."""

    def __init__(self, state_dim, action_dim, hidden_dim,
                 activation="relu", output_activation=None, key=None,
                 matmul_dtype=jnp.bfloat16):
        # TODO(synk): only the default F.relu activation is implemented in-kernel.
        self._state_dim = state_dim
        self._action_dim = action_dim
        self.hidden_dim = hidden_dim
        self.matmul_dtype = matmul_dtype
        if key is None:
            key = jax.random.PRNGKey(0)
        ks = jax.random.split(key, 12)

        def uni(k, shape, fan_in):
            bound = float(fan_in) ** -0.5
            return jax.random.uniform(k, shape, jnp.float32, -bound, bound)

        in_dim = state_dim + action_dim
        H = hidden_dim
        self.params = {
            "w1": uni(ks[0], (H, in_dim), in_dim), "b1": uni(ks[1], (H,), in_dim),
            "w2": uni(ks[2], (H, in_dim), in_dim), "b2": uni(ks[3], (H,), in_dim),
            "w_ih": uni(ks[4], (4 * H, H), H), "b_ih": uni(ks[5], (4 * H,), H),
            "w_hh": uni(ks[6], (4 * H, H), H), "b_hh": uni(ks[7], (4 * H,), H),
            "w3": uni(ks[8], (H, 2 * H), 2 * H), "b3": uni(ks[9], (H,), 2 * H),
            "w4": uni(ks[10], (1, H), H) * 0.03, "b4": uni(ks[11], (1,), H) * 0.03,
        }
        # Pre-split / pre-transposed / bias-folded weights, built once.
        self.kernel_params = _make_kernel_params(
            self.params, state_dim, action_dim, hidden_dim, matmul_dtype)

    def forward(self, state, action, last_action, hidden_in, b_tile=None):
        return _qnet_lstm_forward(self.kernel_params, state, action, last_action,
                                  hidden_in, b_tile=b_tile)

    __call__ = forward


if __name__ == "__main__":
    key = jax.random.PRNGKey(0)
    B, T, S, A, H = 2, 8, 16, 4, 32

    k1, k2, k3, k4, k5, kp = jax.random.split(key, 6)
    state = jax.random.normal(k1, (B, T, S), jnp.float32)
    action = jax.random.normal(k2, (B, T, A), jnp.float32)
    last_action = jax.random.normal(k3, (B, T, A), jnp.float32)
    h0 = jax.random.normal(k4, (1, B, H), jnp.float32)
    c0 = jax.random.normal(k5, (1, B, H), jnp.float32)

    # Pure-JAX reference (f32 matmul precision to match in-kernel f32 accumulation).
    ref_net_params = QNetworkLSTM(S, A, H, key=kp).params
    with jax.default_matmul_precision("float32"):
        q_ref, (h_ref, c_ref) = _forward_ref(ref_net_params, state, action,
                                             last_action, (h0, c0))

    # Default path: bf16 MXU inputs, f32 accumulation / recurrence (v5e/v6e/v7x).
    net = QNetworkLSTM(S, A, H, key=kp)
    q, (h_n, c_n) = net.forward(state, action, last_action, (h0, c0))
    q = jax.block_until_ready(q)
    assert q.shape == (B, T, 1), q.shape
    assert h_n.shape == (1, B, H) and c_n.shape == (1, B, H)
    # bf16 matmul inputs vs. f32 reference -> loose tolerance.
    assert bool(jnp.allclose(q, q_ref, atol=2e-2, rtol=2e-2))
    assert bool(jnp.allclose(h_n, h_ref, atol=2e-2, rtol=2e-2))
    assert bool(jnp.allclose(c_n, c_ref, atol=2e-2, rtol=2e-2))

    # Full-f32 variant for the tight numerical check.
    net32 = QNetworkLSTM(S, A, H, key=kp, matmul_dtype=jnp.float32)
    q32, (h32, c32) = net32.forward(state, action, last_action, (h0, c0))
    q32 = jax.block_until_ready(q32)
    assert bool(jnp.allclose(q32, q_ref, atol=2e-3, rtol=2e-3))
    assert bool(jnp.allclose(h32, h_ref, atol=2e-3, rtol=2e-3))
    assert bool(jnp.allclose(c32, c_ref, atol=2e-3, rtol=2e-3))

    print("KERNEL_OK")
</pallas_src>

<mosaic_0001>
module attributes {stable_mosaic.version = 11 : i64} {
  func.func @_qnet_lstm_kernel(%arg0: i32, %arg1: memref<2x8x16xbf16, #tpu.memory_space<vmem>>, %arg2: memref<2x8x4xbf16, #tpu.memory_space<vmem>>, %arg3: memref<2x8x4xbf16, #tpu.memory_space<vmem>>, %arg4: memref<2x32xf32, #tpu.memory_space<vmem>>, %arg5: memref<2x32xf32, #tpu.memory_space<vmem>>, %arg6: memref<16x32xbf16, #tpu.memory_space<vmem>>, %arg7: memref<4x32xbf16, #tpu.memory_space<vmem>>, %arg8: memref<1x32xf32, #tpu.memory_space<vmem>>, %arg9: memref<16x32xbf16, #tpu.memory_space<vmem>>, %arg10: memref<4x32xbf16, #tpu.memory_space<vmem>>, %arg11: memref<1x32xf32, #tpu.memory_space<vmem>>, %arg12: memref<32x128xbf16, #tpu.memory_space<vmem>>, %arg13: memref<32x128xf32, #tpu.memory_space<vmem>>, %arg14: memref<1x128xf32, #tpu.memory_space<vmem>>, %arg15: memref<32x32xbf16, #tpu.memory_space<vmem>>, %arg16: memref<32x32xbf16, #tpu.memory_space<vmem>>, %arg17: memref<1x32xf32, #tpu.memory_space<vmem>>, %arg18: memref<1x32xf32, #tpu.memory_space<vmem>>, %arg19: memref<1x1xf32, #tpu.memory_space<vmem>>, %arg20: memref<2x8xf32, #tpu.memory_space<vmem>>, %arg21: memref<2x32xf32, #tpu.memory_space<vmem>>, %arg22: memref<2x32xf32, #tpu.memory_space<vmem>>, %arg23: memref<8x2x128xf32, #tpu.memory_space<vmem>>, %arg24: memref<8x2x32xf32, #tpu.memory_space<vmem>>, %arg25: memref<16x32xf32, #tpu.memory_space<vmem>>) attributes {dimension_semantics = [#tpu.dimension_semantics<parallel>], iteration_bounds = array<i64: 1>, scalar_prefetch = 0 : i64, scratch_operands = 3 : i64, tpu.core_type = #tpu.core_type<tc>, window_params = [{transform_indices = @transform_0, window_bounds = array<i64: 2, 8, 16>}, {transform_indices = @transform_1, window_bounds = array<i64: 2, 8, 4>}, {transform_indices = @transform_2, window_bounds = array<i64: 2, 8, 4>}, {transform_indices = @transform_3, window_bounds = array<i64: 2, 32>}, {transform_indices = @transform_4, window_bounds = array<i64: 2, 32>}, {pipeline_mode = #tpu.pipeline_mode<synchronous>, transform_indices = @transform_5, window_bounds = array<i64: 16, 32>}, {pipeline_mode = #tpu.pipeline_mode<synchronous>, transform_indices = @transform_6, window_bounds = array<i64: 4, 32>}, {pipeline_mode = #tpu.pipeline_mode<synchronous>, transform_indices = @transform_7, window_bounds = array<i64: 1, 32>}, {pipeline_mode = #tpu.pipeline_mode<synchronous>, transform_indices = @transform_8, window_bounds = array<i64: 16, 32>}, {pipeline_mode = #tpu.pipeline_mode<synchronous>, transform_indices = @transform_9, window_bounds = array<i64: 4, 32>}, {pipeline_mode = #tpu.pipeline_mode<synchronous>, transform_indices = @transform_10, window_bounds = array<i64: 1, 32>}, {pipeline_mode = #tpu.pipeline_mode<synchronous>, transform_indices = @transform_11, window_bounds = array<i64: 32, 128>}, {pipeline_mode = #tpu.pipeline_mode<synchronous>, transform_indices = @transform_12, window_bounds = array<i64: 32, 128>}, {pipeline_mode = #tpu.pipeline_mode<synchronous>, transform_indices = @transform_13, window_bounds = array<i64: 1, 128>}, {pipeline_mode = #tpu.pipeline_mode<synchronous>, transform_indices = @transform_14, window_bounds = array<i64: 32, 32>}, {pipeline_mode = #tpu.pipeline_mode<synchronous>, transform_indices = @transform_15, window_bounds = array<i64: 32, 32>}, {pipeline_mode = #tpu.pipeline_mode<synchronous>, transform_indices = @transform_16, window_bounds = array<i64: 1, 32>}, {pipeline_mode = #tpu.pipeline_mode<synchronous>, transform_indices = @transform_17, window_bounds = array<i64: 1, 32>}, {pipeline_mode = #tpu.pipeline_mode<synchronous>, transform_indices = @transform_18, window_bounds = array<i64: 1, 1>}, {transform_indices = @transform_19, window_bounds = array<i64: 2, 8>}, {transform_indices = @transform_20, window_bounds = array<i64: 2, 32>}, {transform_indices = @transform_21, window_bounds = array<i64: 2, 32>}]} {
    %c0 = arith.constant 0 : index
    %c0_0 = arith.constant 0 : index
    %c0_1 = arith.constant 0 : index
    %0 = vector.load %arg1[%c0, %c0_0, %c0_1] : memref<2x8x16xbf16, #tpu.memory_space<vmem>>, vector<2x8x16xbf16>
    %1 = vector.shape_cast %0 : vector<2x8x16xbf16> to vector<16x16xbf16>
    %c0_2 = arith.constant 0 : index
    %c0_3 = arith.constant 0 : index
    %c0_4 = arith.constant 0 : index
    %2 = vector.load %arg2[%c0_2, %c0_3, %c0_4] : memref<2x8x4xbf16, #tpu.memory_space<vmem>>, vector<2x8x4xbf16>
    %3 = vector.shape_cast %2 : vector<2x8x4xbf16> to vector<16x4xbf16>
    %c0_5 = arith.constant 0 : index
    %c0_6 = arith.constant 0 : index
    %c0_7 = arith.constant 0 : index
    %4 = vector.load %arg3[%c0_5, %c0_6, %c0_7] : memref<2x8x4xbf16, #tpu.memory_space<vmem>>, vector<2x8x4xbf16>
    %5 = vector.shape_cast %4 : vector<2x8x4xbf16> to vector<16x4xbf16>
    %c0_8 = arith.constant 0 : index
    %c0_9 = arith.constant 0 : index
    %6 = vector.load %arg6[%c0_8, %c0_9] : memref<16x32xbf16, #tpu.memory_space<vmem>>, vector<16x32xbf16>
    %cst = arith.constant dense<0.000000e+00> : vector<16x32xf32>
    %7 = tpu.matmul %1, %6, %cst {dimension_numbers = #tpu.dot_dimension_numbers<[1], [0], [0], [1], [0, 0, 1, 1], [], []>} : vector<16x16xbf16>, vector<16x32xbf16>, vector<16x32xf32> -> vector<16x32xf32>
    %c0_10 = arith.constant 0 : index
    %c0_11 = arith.constant 0 : index
    %8 = vector.load %arg7[%c0_10, %c0_11] : memref<4x32xbf16, #tpu.memory_space<vmem>>, vector<4x32xbf16>
    %cst_12 = arith.constant dense<0.000000e+00> : vector<16x32xf32>
    %9 = tpu.matmul %3, %8, %cst_12 {dimension_numbers = #tpu.dot_dimension_numbers<[1], [0], [0], [1], [0, 0, 1, 1], [], []>} : vector<16x4xbf16>, vector<4x32xbf16>, vector<16x32xf32> -> vector<16x32xf32>
    %10 = arith.addf %7, %9 : vector<16x32xf32>
    %c0_13 = arith.constant 0 : index
    %c0_14 = arith.constant 0 : index
    %11 = vector.load %arg8[%c0_13, %c0_14] : memref<1x32xf32, #tpu.memory_space<vmem>>, vector<1x32xf32>
    %12 = vector.broadcast %11 : vector<1x32xf32> to vector<16x32xf32>
    %13 = arith.addf %10, %12 : vector<16x32xf32>
    %cst_15 = arith.constant 0.000000e+00 : f32
    %14 = vector.broadcast %cst_15 : f32 to vector<16x32xf32>
    %15 = arith.maximumf %13, %14 : vector<16x32xf32>
    %c0_16 = arith.constant 0 : index
    %c0_17 = arith.constant 0 : index
    %16 = vector.load %arg9[%c0_16, %c0_17] : memref<16x32xbf16, #tpu.memory_space<vmem>>, vector<16x32xbf16>
    %cst_18 = arith.constant dense<0.000000e+00> : vector<16x32xf32>
    %17 = tpu.matmul %1, %16, %cst_18 {dimension_numbers = #tpu.dot_dimension_numbers<[1], [0], [0], [1], [0, 0, 1, 1], [], []>} : vector<16x16xbf16>, vector<16x32xbf16>, vector<16x32xf32> -> vector<16x32xf32>
    %c0_19 = arith.constant 0 : index
    %c0_20 = arith.constant 0 : index
    %18 = vector.load %arg10[%c0_19, %c0_20] : memref<4x32xbf16, #tpu.memory_space<vmem>>, vector<4x32xbf16>
    %cst_21 = arith.constant dense<0.000000e+00> : vector<16x32xf32>
    %19 = tpu.matmul %5, %18, %cst_21 {dimension_numbers = #tpu.dot_dimension_numbers<[1], [0], [0], [1], [0, 0, 1, 1], [], []>} : vector<16x4xbf16>, vector<4x32xbf16>, vector<16x32xf32> -> vector<16x32xf32>
    %20 = arith.addf %17, %19 : vector<16x32xf32>
    %c0_22 = arith.constant 0 : index
    %c0_23 = arith.constant 0 : index
    %21 = vector.load %arg11[%c0_22, %c0_23] : memref<1x32xf32, #tpu.memory_space<vmem>>, vector<1x32xf32>
    %22 = vector.broadcast %21 : vector<1x32xf32> to vector<16x32xf32>
    %23 = arith.addf %20, %22 : vector<16x32xf32>
    %cst_24 = arith.constant 0.000000e+00 : f32
    %24 = vector.broadcast %cst_24 : f32 to vector<16x32xf32>
    %25 = arith.maximumf %23, %24 : vector<16x32xf32>
    %26 = arith.truncf %25 : vector<16x32xf32> to vector<16x32xbf16>
    %c0_25 = arith.constant 0 : index
    %c0_26 = arith.constant 0 : index
    %27 = vector.load %arg12[%c0_25, %c0_26] : memref<32x128xbf16, #tpu.memory_space<vmem>>, vector<32x128xbf16>
    %cst_27 = arith.constant dense<0.000000e+00> : vector<16x128xf32>
    %28 = tpu.matmul %26, %27, %cst_27 {dimension_numbers = #tpu.dot_dimension_numbers<[1], [0], [0], [1], [0, 0, 1, 1], [], []>} : vector<16x32xbf16>, vector<32x128xbf16>, vector<16x128xf32> -> vector<16x128xf32>
    %c0_28 = arith.constant 0 : index
    %c0_29 = arith.constant 0 : index
    %29 = vector.load %arg14[%c0_28, %c0_29] : memref<1x128xf32, #tpu.memory_space<vmem>>, vector<1x128xf32>
    %30 = vector.broadcast %29 : vector<1x128xf32> to vector<16x128xf32>
    %31 = arith.addf %28, %30 : vector<16x128xf32>
    %32 = vector.shape_cast %31 : vector<16x128xf32> to vector<2x8x128xf32>
    %33 = tpu.transpose %32, [1, 0, 2] : vector<2x8x128xf32> -> vector<8x2x128xf32>
    %c0_30 = arith.constant 0 : index
    %c0_31 = arith.constant 0 : index
    %c0_32 = arith.constant 0 : index
    %34 = vector.load %arg23[%c0_30, %c0_31, %c0_32] : memref<8x2x128xf32, #tpu.memory_space<vmem>>, vector<8x2x128xf32>
    tpu.vector_store %arg23[%c0_30, %c0_31, %c0_32], %33 {strides = array<i32>} : memref<8x2x128xf32, #tpu.memory_space<vmem>>, vector<8x2x128xf32>,
    %35 = arith.truncf %15 : vector<16x32xf32> to vector<16x32xbf16>
    %c0_33 = arith.constant 0 : index
    %c0_34 = arith.constant 0 : index
    %36 = vector.load %arg15[%c0_33, %c0_34] : memref<32x32xbf16, #tpu.memory_space<vmem>>, vector<32x32xbf16>
    %cst_35 = arith.constant dense<0.000000e+00> : vector<16x32xf32>
    %37 = tpu.matmul %35, %36, %cst_35 {dimension_numbers = #tpu.dot_dimension_numbers<[1], [0], [0], [1], [0, 0, 1, 1], [], []>} : vector<16x32xbf16>, vector<32x32xbf16>, vector<16x32xf32> -> vector<16x32xf32>
    %c0_36 = arith.constant 0 : index
    %c0_37 = arith.constant 0 : index
    %38 = vector.load %arg17[%c0_36, %c0_37] : memref<1x32xf32, #tpu.memory_space<vmem>>, vector<1x32xf32>
    %39 = vector.broadcast %38 : vector<1x32xf32> to vector<16x32xf32>
    %40 = arith.addf %37, %39 : vector<16x32xf32>
    %c0_38 = arith.constant 0 : index
    %c0_39 = arith.constant 0 : index
    %41 = vector.load %arg25[%c0_38, %c0_39] : memref<16x32xf32, #tpu.memory_space<vmem>>, vector<16x32xf32>
    tpu.vector_store %arg25[%c0_38, %c0_39], %40 {strides = array<i32>} : memref<16x32xf32, #tpu.memory_space<vmem>>, vector<16x32xf32>,
    %c0_40 = arith.constant 0 : index
    %c0_41 = arith.constant 0 : index
    %42 = vector.load %arg13[%c0_40, %c0_41] : memref<32x128xf32, #tpu.memory_space<vmem>>, vector<32x128xf32>
    %c0_42 = arith.constant 0 : index
    %c0_43 = arith.constant 0 : index
    %43 = vector.load %arg4[%c0_42, %c0_43] : memref<2x32xf32, #tpu.memory_space<vmem>>, vector<2x32xf32>
    %c0_44 = arith.constant 0 : index
    %c0_45 = arith.constant 0 : index
    %44 = vector.load %arg5[%c0_44, %c0_45] : memref<2x32xf32, #tpu.memory_space<vmem>>, vector<2x32xf32>
    %c0_i32 = arith.constant 0 : i32
    %45 = arith.index_cast %c0_i32 : i32 to index
    %c0_46 = arith.constant 0 : index
    %c0_47 = arith.constant 0 : index
    %46 = vector.load %arg23[%45, %c0_46, %c0_47] : memref<8x2x128xf32, #tpu.memory_space<vmem>>, vector<1x2x128xf32>
    %47 = vector.shape_cast %46 : vector<1x2x128xf32> to vector<2x128xf32>
    %cst_48 = arith.constant dense<0.000000e+00> : vector<2x128xf32>
    %48 = tpu.matmul %43, %42, %cst_48 {dimension_numbers = #tpu.dot_dimension_numbers<[1], [0], [0], [1], [0, 0, 1, 1], [], []>} : vector<2x32xf32>, vector<32x128xf32>, vector<2x128xf32> -> vector<2x128xf32>
    %49 = arith.addf %47, %48 : vector<2x128xf32>
    %50 = vector.extract_strided_slice %49 {offsets = [0, 0], sizes = [2, 32], strides = [1, 1]} : vector<2x128xf32> to vector<2x32xf32>
    %cst_49 = arith.constant 5.000000e-01 : f32
    %51 = vector.broadcast %cst_49 : f32 to vector<2x32xf32>
    %52 = arith.mulf %51, %50 : vector<2x32xf32>
    %53 = math.tanh %52 : vector<2x32xf32>
    %cst_50 = arith.constant 5.000000e-01 : f32
    %54 = vector.broadcast %cst_50 : f32 to vector<2x32xf32>
    %55 = arith.mulf %54, %53 : vector<2x32xf32>
    %cst_51 = arith.constant 5.000000e-01 : f32
    %56 = vector.broadcast %cst_51 : f32 to vector<2x32xf32>
    %57 = arith.addf %55, %56 : vector<2x32xf32>
    %58 = vector.extract_strided_slice %49 {offsets = [0, 32], sizes = [2, 32], strides = [1, 1]} : vector<2x128xf32> to vector<2x32xf32>
    %cst_52 = arith.constant 5.000000e-01 : f32
    %59 = vector.broadcast %cst_52 : f32 to vector<2x32xf32>
    %60 = arith.mulf %59, %58 : vector<2x32xf32>
    %61 = math.tanh %60 : vector<2x32xf32>
    %cst_53 = arith.constant 5.000000e-01 : f32
    %62 = vector.broadcast %cst_53 : f32 to vector<2x32xf32>
    %63 = arith.mulf %62, %61 : vector<2x32xf32>
    %cst_54 = arith.constant 5.000000e-01 : f32
    %64 = vector.broadcast %cst_54 : f32 to vector<2x32xf32>
    %65 = arith.addf %63, %64 : vector<2x32xf32>
    %66 = vector.extract_strided_slice %49 {offsets = [0, 64], sizes = [2, 32], strides = [1, 1]} : vector<2x128xf32> to vector<2x32xf32>
    %67 = math.tanh %66 : vector<2x32xf32>
    %68 = vector.extract_strided_slice %49 {offsets = [0, 96], sizes = [2, 32], strides = [1, 1]} : vector<2x128xf32> to vector<2x32xf32>
    %cst_55 = arith.constant 5.000000e-01 : f32
    %69 = vector.broadcast %cst_55 : f32 to vector<2x32xf32>
    %70 = arith.mulf %69, %68 : vector<2x32xf32>
    %71 = math.tanh %70 : vector<2x32xf32>
    %cst_56 = arith.constant 5.000000e-01 : f32
    %72 = vector.broadcast %cst_56 : f32 to vector<2x32xf32>
    %73 = arith.mulf %72, %71 : vector<2x32xf32>
    %cst_57 = arith.constant 5.000000e-01 : f32
    %74 = vector.broadcast %cst_57 : f32 to vector<2x32xf32>
    %75 = arith.addf %73, %74 : vector<2x32xf32>
    %76 = arith.mulf %65, %44 : vector<2x32xf32>
    %77 = arith.mulf %57, %67 : vector<2x32xf32>
    %78 = arith.addf %76, %77 : vector<2x32xf32>
    %79 = math.tanh %78 : vector<2x32xf32>
    %80 = arith.mulf %75, %79 : vector<2x32xf32>
    %81 = arith.index_cast %c0_i32 : i32 to index
    %c0_58 = arith.constant 0 : index
    %c0_59 = arith.constant 0 : index
    %82 = vector.load %arg24[%81, %c0_58, %c0_59] : memref<8x2x32xf32, #tpu.memory_space<vmem>>, vector<1x2x32xf32>
    %83 = vector.shape_cast %82 : vector<1x2x32xf32> to vector<2x32xf32>
    %84 = vector.shape_cast %80 : vector<2x32xf32> to vector<1x2x32xf32>
    tpu.vector_store %arg24[%81, %c0_58, %c0_59], %84 {strides = array<i32>} : memref<8x2x32xf32, #tpu.memory_space<vmem>>, vector<1x2x32xf32>,
    %c1_i32 = arith.constant 1 : i32
    %85 = arith.index_cast %c1_i32 : i32 to index
    %c0_60 = arith.constant 0 : index
    %c0_61 = arith.constant 0 : index
    %86 = vector.load %arg23[%85, %c0_60, %c0_61] : memref<8x2x128xf32, #tpu.memory_space<vmem>>, vector<1x2x128xf32>
    %87 = vector.shape_cast %86 : vector<1x2x128xf32> to vector<2x128xf32>
    %cst_62 = arith.constant dense<0.000000e+00> : vector<2x128xf32>
    %88 = tpu.matmul %80, %42, %cst_62 {dimension_numbers = #tpu.dot_dimension_numbers<[1], [0], [0], [1], [0, 0, 1, 1], [], []>} : vector<2x32xf32>, vector<32x128xf32>, vector<2x128xf32> -> vector<2x128xf32>
    %89 = arith.addf %87, %88 : vector<2x128xf32>
    %90 = vector.extract_strided_slice %89 {offsets = [0, 0], sizes = [2, 32], strides = [1, 1]} : vector<2x128xf32> to vector<2x32xf32>
    %cst_63 = arith.constant 5.000000e-01 : f32
    %91 = vector.broadcast %cst_63 : f32 to vector<2x32xf32>
    %92 = arith.mulf %91, %90 : vector<2x32xf32>
    %93 = math.tanh %92 : vector<2x32xf32>
    %cst_64 = arith.constant 5.000000e-01 : f32
    %94 = vector.broadcast %cst_64 : f32 to vector<2x32xf32>
    %95 = arith.mulf %94, %93 : vector<2x32xf32>
    %cst_65 = arith.constant 5.000000e-01 : f32
    %96 = vector.broadcast %cst_65 : f32 to vector<2x32xf32>
    %97 = arith.addf %95, %96 : vector<2x32xf32>
    %98 = vector.extract_strided_slice %89 {offsets = [0, 32], sizes = [2, 32], strides = [1, 1]} : vector<2x128xf32> to vector<2x32xf32>
    %cst_66 = arith.constant 5.000000e-01 : f32
    %99 = vector.broadcast %cst_66 : f32 to vector<2x32xf32>
    %100 = arith.mulf %99, %98 : vector<2x32xf32>
    %101 = math.tanh %100 : vector<2x32xf32>
    %cst_67 = arith.constant 5.000000e-01 : f32
    %102 = vector.broadcast %cst_67 : f32 to vector<2x32xf32>
    %103 = arith.mulf %102, %101 : vector<2x32xf32>
    %cst_68 = arith.constant 5.000000e-01 : f32
    %104 = vector.broadcast %cst_68 : f32 to vector<2x32xf32>
    %105 = arith.addf %103, %104 : vector<2x32xf32>
    %106 = vector.extract_strided_slice %89 {offsets = [0, 64], sizes = [2, 32], strides = [1, 1]} : vector<2x128xf32> to vector<2x32xf32>
    %107 = math.tanh %106 : vector<2x32xf32>
    %108 = vector.extract_strided_slice %89 {offsets = [0, 96], sizes = [2, 32], strides = [1, 1]} : vector<2x128xf32> to vector<2x32xf32>
    %cst_69 = arith.constant 5.000000e-01 : f32
    %109 = vector.broadcast %cst_69 : f32 to vector<2x32xf32>
    %110 = arith.mulf %109, %108 : vector<2x32xf32>
    %111 = math.tanh %110 : vector<2x32xf32>
    %cst_70 = arith.constant 5.000000e-01 : f32
    %112 = vector.broadcast %cst_70 : f32 to vector<2x32xf32>
    %113 = arith.mulf %112, %111 : vector<2x32xf32>
    %cst_71 = arith.constant 5.000000e-01 : f32
    %114 = vector.broadcast %cst_71 : f32 to vector<2x32xf32>
    %115 = arith.addf %113, %114 : vector<2x32xf32>
    %116 = arith.mulf %105, %78 : vector<2x32xf32>
    %117 = arith.mulf %97, %107 : vector<2x32xf32>
    %118 = arith.addf %116, %117 : vector<2x32xf32>
    %119 = math.tanh %118 : vector<2x32xf32>
    %120 = arith.mulf %115, %119 : vector<2x32xf32>
    %121 = arith.index_cast %c1_i32 : i32 to index
    %c0_72 = arith.constant 0 : index
    %c0_73 = arith.constant 0 : index
    %122 = vector.load %arg24[%121, %c0_72, %c0_73] : memref<8x2x32xf32, #tpu.memory_space<vmem>>, vector<1x2x32xf32>
    %123 = vector.shape_cast %122 : vector<1x2x32xf32> to vector<2x32xf32>
    %124 = vector.shape_cast %120 : vector<2x32xf32> to vector<1x2x32xf32>
    tpu.vector_store %arg24[%121, %c0_72, %c0_73], %124 {strides = array<i32>} : memref<8x2x32xf32, #tpu.memory_space<vmem>>, vector<1x2x32xf32>,
    %c2_i32 = arith.constant 2 : i32
    %125 = arith.index_cast %c2_i32 : i32 to index
    %c0_74 = arith.constant 0 : index
    %c0_75 = arith.constant 0 : index
    %126 = vector.load %arg23[%125, %c0_74, %c0_75] : memref<8x2x128xf32, #tpu.memory_space<vmem>>, vector<1x2x128xf32>
    %127 = vector.shape_cast %126 : vector<1x2x128xf32> to vector<2x128xf32>
    %cst_76 = arith.constant dense<0.000000e+00> : vector<2x128xf32>
    %128 = tpu.matmul %120, %42, %cst_76 {dimension_numbers = #tpu.dot_dimension_numbers<[1], [0], [0], [1], [0, 0, 1, 1], [], []>} : vector<2x32xf32>, vector<32x128xf32>, vector<2x128xf32> -> vector<2x128xf32>
    %129 = arith.addf %127, %128 : vector<2x128xf32>
    %130 = vector.extract_strided_slice %129 {offsets = [0, 0], sizes = [2, 32], strides = [1, 1]} : vector<2x128xf32> to vector<2x32xf32>
    %cst_77 = arith.constant 5.000000e-01 : f32
    %131 = vector.broadcast %cst_77 : f32 to vector<2x32xf32>
    %132 = arith.mulf %131, %130 : vector<2x32xf32>
    %133 = math.tanh %132 : vector<2x32xf32>
    %cst_78 = arith.constant 5.000000e-01 : f32
    %134 = vector.broadcast %cst_78 : f32 to vector<2x32xf32>
    %135 = arith.mulf %134, %133 : vector<2x32xf32>
    %cst_79 = arith.constant 5.000000e-01 : f32
    %136 = vector.broadcast %cst_79 : f32 to vector<2x32xf32>
    %137 = arith.addf %135, %136 : vector<2x32xf32>
    %138 = vector.extract_strided_slice %129 {offsets = [0, 32], sizes = [2, 32], strides = [1, 1]} : vector<2x128xf32> to vector<2x32xf32>
    %cst_80 = arith.constant 5.000000e-01 : f32
    %139 = vector.broadcast %cst_80 : f32 to vector<2x32xf32>
    %140 = arith.mulf %139, %138 : vector<2x32xf32>
    %141 = math.tanh %140 : vector<2x32xf32>
    %cst_81 = arith.constant 5.000000e-01 : f32
    %142 = vector.broadcast %cst_81 : f32 to vector<2x32xf32>
    %143 = arith.mulf %142, %141 : vector<2x32xf32>
    %cst_82 = arith.constant 5.000000e-01 : f32
    %144 = vector.broadcast %cst_82 : f32 to vector<2x32xf32>
    %145 = arith.addf %143, %144 : vector<2x32xf32>
    %146 = vector.extract_strided_slice %129 {offsets = [0, 64], sizes = [2, 32], strides = [1, 1]} : vector<2x128xf32> to vector<2x32xf32>
    %147 = math.tanh %146 : vector<2x32xf32>
    %148 = vector.extract_strided_slice %129 {offsets = [0, 96], sizes = [2, 32], strides = [1, 1]} : vector<2x128xf32> to vector<2x32xf32>
    %cst_83 = arith.constant 5.000000e-01 : f32
    %149 = vector.broadcast %cst_83 : f32 to vector<2x32xf32>
    %150 = arith.mulf %149, %148 : vector<2x32xf32>
    %151 = math.tanh %150 : vector<2x32xf32>
    %cst_84 = arith.constant 5.000000e-01 : f32
    %152 = vector.broadcast %cst_84 : f32 to vector<2x32xf32>
    %153 = arith.mulf %152, %151 : vector<2x32xf32>
    %cst_85 = arith.constant 5.000000e-01 : f32
    %154 = vector.broadcast %cst_85 : f32 to vector<2x32xf32>
    %155 = arith.addf %153, %154 : vector<2x32xf32>
    %156 = arith.mulf %145, %118 : vector<2x32xf32>
    %157 = arith.mulf %137, %147 : vector<2x32xf32>
    %158 = arith.addf %156, %157 : vector<2x32xf32>
    %159 = math.tanh %158 : vector<2x32xf32>
    %160 = arith.mulf %155, %159 : vector<2x32xf32>
    %161 = arith.index_cast %c2_i32 : i32 to index
    %c0_86 = arith.constant 0 : index
    %c0_87 = arith.constant 0 : index
    %162 = vector.load %arg24[%161, %c0_86, %c0_87] : memref<8x2x32xf32, #tpu.memory_space<vmem>>, vector<1x2x32xf32>
    %163 = vector.shape_cast %162 : vector<1x2x32xf32> to vector<2x32xf32>
    %164 = vector.shape_cast %160 : vector<2x32xf32> to vector<1x2x32xf32>
    tpu.vector_store %arg24[%161, %c0_86, %c0_87], %164 {strides = array<i32>} : memref<8x2x32xf32, #tpu.memory_space<vmem>>, vector<1x2x32xf32>,
    %c3_i32 = arith.constant 3 : i32
    %165 = arith.index_cast %c3_i32 : i32 to index
    %c0_88 = arith.constant 0 : index
    %c0_89 = arith.constant 0 : index
    %166 = vector.load %arg23[%165, %c0_88, %c0_89] : memref<8x2x128xf32, #tpu.memory_space<vmem>>, vector<1x2x128xf32>
    %167 = vector.shape_cast %166 : vector<1x2x128xf32> to vector<2x128xf32>
    %cst_90 = arith.constant dense<0.000000e+00> : vector<2x128xf32>
    %168 = tpu.matmul %160, %42, %cst_90 {dimension_numbers = #tpu.dot_dimension_numbers<[1], [0], [0], [1], [0, 0, 1, 1], [], []>} : vector<2x32xf32>, vector<32x128xf32>, vector<2x128xf32> -> vector<2x128xf32>
    %169 = arith.addf %167, %168 : vector<2x128xf32>
    %170 = vector.extract_strided_slice %169 {offsets = [0, 0], sizes = [2, 32], strides = [1, 1]} : vector<2x128xf32> to vector<2x32xf32>
    %cst_91 = arith.constant 5.000000e-01 : f32
    %171 = vector.broadcast %cst_91 : f32 to vector<2x32xf32>
    %172 = arith.mulf %171, %170 : vector<2x32xf32>
    %173 = math.tanh %172 : vector<2x32xf32>
    %cst_92 = arith.constant 5.000000e-01 : f32
    %174 = vector.broadcast %cst_92 : f32 to vector<2x32xf32>
    %175 = arith.mulf %174, %173 : vector<2x32xf32>
    %cst_93 = arith.constant 5.000000e-01 : f32
    %176 = vector.broadcast %cst_93 : f32 to vector<2x32xf32>
    %177 = arith.addf %175, %176 : vector<2x32xf32>
    %178 = vector.extract_strided_slice %169 {offsets = [0, 32], sizes = [2, 32], strides = [1, 1]} : vector<2x128xf32> to vector<2x32xf32>
    %cst_94 = arith.constant 5.000000e-01 : f32
    %179 = vector.broadcast %cst_94 : f32 to vector<2x32xf32>
    %180 = arith.mulf %179, %178 : vector<2x32xf32>
    %181 = math.tanh %180 : vector<2x32xf32>
    %cst_95 = arith.constant 5.000000e-01 : f32
    %182 = vector.broadcast %cst_95 : f32 to vector<2x32xf32>
    %183 = arith.mulf %182, %181 : vector<2x32xf32>
    %cst_96 = arith.constant 5.000000e-01 : f32
    %184 = vector.broadcast %cst_96 : f32 to vector<2x32xf32>
    %185 = arith.addf %183, %184 : vector<2x32xf32>
    %186 = vector.extract_strided_slice %169 {offsets = [0, 64], sizes = [2, 32], strides = [1, 1]} : vector<2x128xf32> to vector<2x32xf32>
    %187 = math.tanh %186 : vector<2x32xf32>
    %188 = vector.extract_strided_slice %169 {offsets = [0, 96], sizes = [2, 32], strides = [1, 1]} : vector<2x128xf32> to vector<2x32xf32>
    %cst_97 = arith.constant 5.000000e-01 : f32
    %189 = vector.broadcast %cst_97 : f32 to vector<2x32xf32>
    %190 = arith.mulf %189, %188 : vector<2x32xf32>
    %191 = math.tanh %190 : vector<2x32xf32>
    %cst_98 = arith.constant 5.000000e-01 : f32
    %192 = vector.broadcast %cst_98 : f32 to vector<2x32xf32>
    %193 = arith.mulf %192, %191 : vector<2x32xf32>
    %cst_99 = arith.constant 5.000000e-01 : f32
    %194 = vector.broadcast %cst_99 : f32 to vector<2x32xf32>
    %195 = arith.addf %193, %194 : vector<2x32xf32>
    %196 = arith.mulf %185, %158 : vector<2x32xf32>
    %197 = arith.mulf %177, %187 : vector<2x32xf32>
    %198 = arith.addf %196, %197 : vector<2x32xf32>
    %199 = math.tanh %198 : vector<2x32xf32>
    %200 = arith.mulf %195, %199 : vector<2x32xf32>
    %201 = arith.index_cast %c3_i32 : i32 to index
    %c0_100 = arith.constant 0 : index
    %c0_101 = arith.constant 0 : index
    %202 = vector.load %arg24[%201, %c0_100, %c0_101] : memref<8x2x32xf32, #tpu.memory_space<vmem>>, vector<1x2x32xf32>
    %203 = vector.shape_cast %202 : vector<1x2x32xf32> to vector<2x32xf32>
    %204 = vector.shape_cast %200 : vector<2x32xf32> to vector<1x2x32xf32>
    tpu.vector_store %arg24[%201, %c0_100, %c0_101], %204 {strides = array<i32>} : memref<8x2x32xf32, #tpu.memory_space<vmem>>, vector<1x2x32xf32>,
    %c4_i32 = arith.constant 4 : i32
    %205 = arith.index_cast %c4_i32 : i32 to index
    %c0_102 = arith.constant 0 : index
    %c0_103 = arith.constant 0 : index
    %206 = vector.load %arg23[%205, %c0_102, %c0_103] : memref<8x2x128xf32, #tpu.memory_space<vmem>>, vector<1x2x128xf32>
    %207 = vector.shape_cast %206 : vector<1x2x128xf32> to vector<2x128xf32>
    %cst_104 = arith.constant dense<0.000000e+00> : vector<2x128xf32>
    %208 = tpu.matmul %200, %42, %cst_104 {dimension_numbers = #tpu.dot_dimension_numbers<[1], [0], [0], [1], [0, 0, 1, 1], [], []>} : vector<2x32xf32>, vector<32x128xf32>, vector<2x128xf32> -> vector<2x128xf32>
    %209 = arith.addf %207, %208 : vector<2x128xf32>
    %210 = vector.extract_strided_slice %209 {offsets = [0, 0], sizes = [2, 32], strides = [1, 1]} : vector<2x128xf32> to vector<2x32xf32>
    %cst_105 = arith.constant 5.000000e-01 : f32
    %211 = vector.broadcast %cst_105 : f32 to vector<2x32xf32>
    %212 = arith.mulf %211, %210 : vector<2x32xf32>
    %213 = math.tanh %212 : vector<2x32xf32>
    %cst_106 = arith.constant 5.000000e-01 : f32
    %214 = vector.broadcast %cst_106 : f32 to vector<2x32xf32>
    %215 = arith.mulf %214, %213 : vector<2x32xf32>
    %cst_107 = arith.constant 5.000000e-01 : f32
    %216 = vector.broadcast %cst_107 : f32 to vector<2x32xf32>
    %217 = arith.addf %215, %216 : vector<2x32xf32>
    %218 = vector.extract_strided_slice %209 {offsets = [0, 32], sizes = [2, 32], strides = [1, 1]} : vector<2x128xf32> to vector<2x32xf32>
    %cst_108 = arith.constant 5.000000e-01 : f32
    %219 = vector.broadcast %cst_108 : f32 to vector<2x32xf32>
    %220 = arith.mulf %219, %218 : vector<2x32xf32>
    %221 = math.tanh %220 : vector<2x32xf32>
    %cst_109 = arith.constant 5.000000e-01 : f32
    %222 = vector.broadcast %cst_109 : f32 to vector<2x32xf32>
    %223 = arith.mulf %222, %221 : vector<2x32xf32>
    %cst_110 = arith.constant 5.000000e-01 : f32
    %224 = vector.broadcast %cst_110 : f32 to vector<2x32xf32>
    %225 = arith.addf %223, %224 : vector<2x32xf32>
    %226 = vector.extract_strided_slice %209 {offsets = [0, 64], sizes = [2, 32], strides = [1, 1]} : vector<2x128xf32> to vector<2x32xf32>
    %227 = math.tanh %226 : vector<2x32xf32>
    %228 = vector.extract_strided_slice %209 {offsets = [0, 96], sizes = [2, 32], strides = [1, 1]} : vector<2x128xf32> to vector<2x32xf32>
    %cst_111 = arith.constant 5.000000e-01 : f32
    %229 = vector.broadcast %cst_111 : f32 to vector<2x32xf32>
    %230 = arith.mulf %229, %228 : vector<2x32xf32>
    %231 = math.tanh %230 : vector<2x32xf32>
    %cst_112 = arith.constant 5.000000e-01 : f32
    %232 = vector.broadcast %cst_112 : f32 to vector<2x32xf32>
    %233 = arith.mulf %232, %231 : vector<2x32xf32>
    %cst_113 = arith.constant 5.000000e-01 : f32
    %234 = vector.broadcast %cst_113 : f32 to vector<2x32xf32>
    %235 = arith.addf %233, %234 : vector<2x32xf32>
    %236 = arith.mulf %225, %198 : vector<2x32xf32>
    %237 = arith.mulf %217, %227 : vector<2x32xf32>
    %238 = arith.addf %236, %237 : vector<2x32xf32>
    %239 = math.tanh %238 : vector<2x32xf32>
    %240 = arith.mulf %235, %239 : vector<2x32xf32>
    %241 = arith.index_cast %c4_i32 : i32 to index
    %c0_114 = arith.constant 0 : index
    %c0_115 = arith.constant 0 : index
    %242 = vector.load %arg24[%241, %c0_114, %c0_115] : memref<8x2x32xf32, #tpu.memory_space<vmem>>, vector<1x2x32xf32>
    %243 = vector.shape_cast %242 : vector<1x2x32xf32> to vector<2x32xf32>
    %244 = vector.shape_cast %240 : vector<2x32xf32> to vector<1x2x32xf32>
    tpu.vector_store %arg24[%241, %c0_114, %c0_115], %244 {strides = array<i32>} : memref<8x2x32xf32, #tpu.memory_space<vmem>>, vector<1x2x32xf32>,
    %c5_i32 = arith.constant 5 : i32
    %245 = arith.index_cast %c5_i32 : i32 to index
    %c0_116 = arith.constant 0 : index
    %c0_117 = arith.constant 0 : index
    %246 = vector.load %arg23[%245, %c0_116, %c0_117] : memref<8x2x128xf32, #tpu.memory_space<vmem>>, vector<1x2x128xf32>
    %247 = vector.shape_cast %246 : vector<1x2x128xf32> to vector<2x128xf32>
    %cst_118 = arith.constant dense<0.000000e+00> : vector<2x128xf32>
    %248 = tpu.matmul %240, %42, %cst_118 {dimension_numbers = #tpu.dot_dimension_numbers<[1], [0], [0], [1], [0, 0, 1, 1], [], []>} : vector<2x32xf32>, vector<32x128xf32>, vector<2x128xf32> -> vector<2x128xf32>
    %249 = arith.addf %247, %248 : vector<2x128xf32>
    %250 = vector.extract_strided_slice %249 {offsets = [0, 0], sizes = [2, 32], strides = [1, 1]} : vector<2x128xf32> to vector<2x32xf32>
    %cst_119 = arith.constant 5.000000e-01 : f32
    %251 = vector.broadcast %cst_119 : f32 to vector<2x32xf32>
    %252 = arith.mulf %251, %250 : vector<2x32xf32>
    %253 = math.tanh %252 : vector<2x32xf32>
    %cst_120 = arith.constant 5.000000e-01 : f32
    %254 = vector.broadcast %cst_120 : f32 to vector<2x32xf32>
    %255 = arith.mulf %254, %253 : vector<2x32xf32>
    %cst_121 = arith.constant 5.000000e-01 : f32
    %256 = vector.broadcast %cst_121 : f32 to vector<2x32xf32>
    %257 = arith.addf %255, %256 : vector<2x32xf32>
    %258 = vector.extract_strided_slice %249 {offsets = [0, 32], sizes = [2, 32], strides = [1, 1]} : vector<2x128xf32> to vector<2x32xf32>
    %cst_122 = arith.constant 5.000000e-01 : f32
    %259 = vector.broadcast %cst_122 : f32 to vector<2x32xf32>
    %260 = arith.mulf %259, %258 : vector<2x32xf32>
    %261 = math.tanh %260 : vector<2x32xf32>
    %cst_123 = arith.constant 5.000000e-01 : f32
    %262 = vector.broadcast %cst_123 : f32 to vector<2x32xf32>
    %263 = arith.mulf %262, %261 : vector<2x32xf32>
    %cst_124 = arith.constant 5.000000e-01 : f32
    %264 = vector.broadcast %cst_124 : f32 to vector<2x32xf32>
    %265 = arith.addf %263, %264 : vector<2x32xf32>
    %266 = vector.extract_strided_slice %249 {offsets = [0, 64], sizes = [2, 32], strides = [1, 1]} : vector<2x128xf32> to vector<2x32xf32>
    %267 = math.tanh %266 : vector<2x32xf32>
    %268 = vector.extract_strided_slice %249 {offsets = [0, 96], sizes = [2, 32], strides = [1, 1]} : vector<2x128xf32> to vector<2x32xf32>
    %cst_125 = arith.constant 5.000000e-01 : f32
    %269 = vector.broadcast %cst_125 : f32 to vector<2x32xf32>
    %270 = arith.mulf %269, %268 : vector<2x32xf32>
    %271 = math.tanh %270 : vector<2x32xf32>
    %cst_126 = arith.constant 5.000000e-01 : f32
    %272 = vector.broadcast %cst_126 : f32 to vector<2x32xf32>
    %273 = arith.mulf %272, %271 : vector<2x32xf32>
    %cst_127 = arith.constant 5.000000e-01 : f32
    %274 = vector.broadcast %cst_127 : f32 to vector<2x32xf32>
    %275 = arith.addf %273, %274 : vector<2x32xf32>
    %276 = arith.mulf %265, %238 : vector<2x32xf32>
    %277 = arith.mulf %257, %267 : vector<2x32xf32>
    %278 = arith.addf %276, %277 : vector<2x32xf32>
    %279 = math.tanh %278 : vector<2x32xf32>
    %280 = arith.mulf %275, %279 : vector<2x32xf32>
    %281 = arith.index_cast %c5_i32 : i32 to index
    %c0_128 = arith.constant 0 : index
    %c0_129 = arith.constant 0 : index
    %282 = vector.load %arg24[%281, %c0_128, %c0_129] : memref<8x2x32xf32, #tpu.memory_space<vmem>>, vector<1x2x32xf32>
    %283 = vector.shape_cast %282 : vector<1x2x32xf32> to vector<2x32xf32>
    %284 = vector.shape_cast %280 : vector<2x32xf32> to vector<1x2x32xf32>
    tpu.vector_store %arg24[%281, %c0_128, %c0_129], %284 {strides = array<i32>} : memref<8x2x32xf32, #tpu.memory_space<vmem>>, vector<1x2x32xf32>,
    %c6_i32 = arith.constant 6 : i32
    %285 = arith.index_cast %c6_i32 : i32 to index
    %c0_130 = arith.constant 0 : index
    %c0_131 = arith.constant 0 : index
    %286 = vector.load %arg23[%285, %c0_130, %c0_131] : memref<8x2x128xf32, #tpu.memory_space<vmem>>, vector<1x2x128xf32>
    %287 = vector.shape_cast %286 : vector<1x2x128xf32> to vector<2x128xf32>
    %cst_132 = arith.constant dense<0.000000e+00> : vector<2x128xf32>
    %288 = tpu.matmul %280, %42, %cst_132 {dimension_numbers = #tpu.dot_dimension_numbers<[1], [0], [0], [1], [0, 0, 1, 1], [], []>} : vector<2x32xf32>, vector<32x128xf32>, vector<2x128xf32> -> vector<2x128xf32>
    %289 = arith.addf %287, %288 : vector<2x128xf32>
    %290 = vector.extract_strided_slice %289 {offsets = [0, 0], sizes = [2, 32], strides = [1, 1]} : vector<2x128xf32> to vector<2x32xf32>
    %cst_133 = arith.constant 5.000000e-01 : f32
    %291 = vector.broadcast %cst_133 : f32 to vector<2x32xf32>
    %292 = arith.mulf %291, %290 : vector<2x32xf32>
    %293 = math.tanh %292 : vector<2x32xf32>
    %cst_134 = arith.constant 5.000000e-01 : f32
    %294 = vector.broadcast %cst_134 : f32 to vector<2x32xf32>
    %295 = arith.mulf %294, %293 : vector<2x32xf32>
    %cst_135 = arith.constant 5.000000e-01 : f32
    %296 = vector.broadcast %cst_135 : f32 to vector<2x32xf32>
    %297 = arith.addf %295, %296 : vector<2x32xf32>
    %298 = vector.extract_strided_slice %289 {offsets = [0, 32], sizes = [2, 32], strides = [1, 1]} : vector<2x128xf32> to vector<2x32xf32>
    %cst_136 = arith.constant 5.000000e-01 : f32
    %299 = vector.broadcast %cst_136 : f32 to vector<2x32xf32>
    %300 = arith.mulf %299, %298 : vector<2x32xf32>
    %301 = math.tanh %300 : vector<2x32xf32>
    %cst_137 = arith.constant 5.000000e-01 : f32
    %302 = vector.broadcast %cst_137 : f32 to vector<2x32xf32>
    %303 = arith.mulf %302, %301 : vector<2x32xf32>
    %cst_138 = arith.constant 5.000000e-01 : f32
    %304 = vector.broadcast %cst_138 : f32 to vector<2x32xf32>
    %305 = arith.addf %303, %304 : vector<2x32xf32>
    %306 = vector.extract_strided_slice %289 {offsets = [0, 64], sizes = [2, 32], strides = [1, 1]} : vector<2x128xf32> to vector<2x32xf32>
    %307 = math.tanh %306 : vector<2x32xf32>
    %308 = vector.extract_strided_slice %289 {offsets = [0, 96], sizes = [2, 32], strides = [1, 1]} : vector<2x128xf32> to vector<2x32xf32>
    %cst_139 = arith.constant 5.000000e-01 : f32
    %309 = vector.broadcast %cst_139 : f32 to vector<2x32xf32>
    %310 = arith.mulf %309, %308 : vector<2x32xf32>
    %311 = math.tanh %310 : vector<2x32xf32>
    %cst_140 = arith.constant 5.000000e-01 : f32
    %312 = vector.broadcast %cst_140 : f32 to vector<2x32xf32>
    %313 = arith.mulf %312, %311 : vector<2x32xf32>
    %cst_141 = arith.constant 5.000000e-01 : f32
    %314 = vector.broadcast %cst_141 : f32 to vector<2x32xf32>
    %315 = arith.addf %313, %314 : vector<2x32xf32>
    %316 = arith.mulf %305, %278 : vector<2x32xf32>
    %317 = arith.mulf %297, %307 : vector<2x32xf32>
    %318 = arith.addf %316, %317 : vector<2x32xf32>
    %319 = math.tanh %318 : vector<2x32xf32>
    %320 = arith.mulf %315, %319 : vector<2x32xf32>
    %321 = arith.index_cast %c6_i32 : i32 to index
    %c0_142 = arith.constant 0 : index
    %c0_143 = arith.constant 0 : index
    %322 = vector.load %arg24[%321, %c0_142, %c0_143] : memref<8x2x32xf32, #tpu.memory_space<vmem>>, vector<1x2x32xf32>
    %323 = vector.shape_cast %322 : vector<1x2x32xf32> to vector<2x32xf32>
    %324 = vector.shape_cast %320 : vector<2x32xf32> to vector<1x2x32xf32>
    tpu.vector_store %arg24[%321, %c0_142, %c0_143], %324 {strides = array<i32>} : memref<8x2x32xf32, #tpu.memory_space<vmem>>, vector<1x2x32xf32>,
    %c7_i32 = arith.constant 7 : i32
    %325 = arith.index_cast %c7_i32 : i32 to index
    %c0_144 = arith.constant 0 : index
    %c0_145 = arith.constant 0 : index
    %326 = vector.load %arg23[%325, %c0_144, %c0_145] : memref<8x2x128xf32, #tpu.memory_space<vmem>>, vector<1x2x128xf32>
    %327 = vector.shape_cast %326 : vector<1x2x128xf32> to vector<2x128xf32>
    %cst_146 = arith.constant dense<0.000000e+00> : vector<2x128xf32>
    %328 = tpu.matmul %320, %42, %cst_146 {dimension_numbers = #tpu.dot_dimension_numbers<[1], [0], [0], [1], [0, 0, 1, 1], [], []>} : vector<2x32xf32>, vector<32x128xf32>, vector<2x128xf32> -> vector<2x128xf32>
    %329 = arith.addf %327, %328 : vector<2x128xf32>
    %330 = vector.extract_strided_slice %329 {offsets = [0, 0], sizes = [2, 32], strides = [1, 1]} : vector<2x128xf32> to vector<2x32xf32>
    %cst_147 = arith.constant 5.000000e-01 : f32
    %331 = vector.broadcast %cst_147 : f32 to vector<2x32xf32>
    %332 = arith.mulf %331, %330 : vector<2x32xf32>
    %333 = math.tanh %332 : vector<2x32xf32>
    %cst_148 = arith.constant 5.000000e-01 : f32
    %334 = vector.broadcast %cst_148 : f32 to vector<2x32xf32>
    %335 = arith.mulf %334, %333 : vector<2x32xf32>
    %cst_149 = arith.constant 5.000000e-01 : f32
    %336 = vector.broadcast %cst_149 : f32 to vector<2x32xf32>
    %337 = arith.addf %335, %336 : vector<2x32xf32>
    %338 = vector.extract_strided_slice %329 {offsets = [0, 32], sizes = [2, 32], strides = [1, 1]} : vector<2x128xf32> to vector<2x32xf32>
    %cst_150 = arith.constant 5.000000e-01 : f32
    %339 = vector.broadcast %cst_150 : f32 to vector<2x32xf32>
    %340 = arith.mulf %339, %338 : vector<2x32xf32>
    %341 = math.tanh %340 : vector<2x32xf32>
    %cst_151 = arith.constant 5.000000e-01 : f32
    %342 = vector.broadcast %cst_151 : f32 to vector<2x32xf32>
    %343 = arith.mulf %342, %341 : vector<2x32xf32>
    %cst_152 = arith.constant 5.000000e-01 : f32
    %344 = vector.broadcast %cst_152 : f32 to vector<2x32xf32>
    %345 = arith.addf %343, %344 : vector<2x32xf32>
    %346 = vector.extract_strided_slice %329 {offsets = [0, 64], sizes = [2, 32], strides = [1, 1]} : vector<2x128xf32> to vector<2x32xf32>
    %347 = math.tanh %346 : vector<2x32xf32>
    %348 = vector.extract_strided_slice %329 {offsets = [0, 96], sizes = [2, 32], strides = [1, 1]} : vector<2x128xf32> to vector<2x32xf32>
    %cst_153 = arith.constant 5.000000e-01 : f32
    %349 = vector.broadcast %cst_153 : f32 to vector<2x32xf32>
    %350 = arith.mulf %349, %348 : vector<2x32xf32>
    %351 = math.tanh %350 : vector<2x32xf32>
    %cst_154 = arith.constant 5.000000e-01 : f32
    %352 = vector.broadcast %cst_154 : f32 to vector<2x32xf32>
    %353 = arith.mulf %352, %351 : vector<2x32xf32>
    %cst_155 = arith.constant 5.000000e-01 : f32
    %354 = vector.broadcast %cst_155 : f32 to vector<2x32xf32>
    %355 = arith.addf %353, %354 : vector<2x32xf32>
    %356 = arith.mulf %345, %318 : vector<2x32xf32>
    %357 = arith.mulf %337, %347 : vector<2x32xf32>
    %358 = arith.addf %356, %357 : vector<2x32xf32>
    %359 = math.tanh %358 : vector<2x32xf32>
    %360 = arith.mulf %355, %359 : vector<2x32xf32>
    %361 = arith.index_cast %c7_i32 : i32 to index
    %c0_156 = arith.constant 0 : index
    %c0_157 = arith.constant 0 : index
    %362 = vector.load %arg24[%361, %c0_156, %c0_157] : memref<8x2x32xf32, #tpu.memory_space<vmem>>, vector<1x2x32xf32>
    %363 = vector.shape_cast %362 : vector<1x2x32xf32> to vector<2x32xf32>
    %364 = vector.shape_cast %360 : vector<2x32xf32> to vector<1x2x32xf32>
    tpu.vector_store %arg24[%361, %c0_156, %c0_157], %364 {strides = array<i32>} : memref<8x2x32xf32, #tpu.memory_space<vmem>>, vector<1x2x32xf32>,
    %c8_i32 = arith.constant 8 : i32
    %c0_158 = arith.constant 0 : index
    %c0_159 = arith.constant 0 : index
    %365 = vector.load %arg21[%c0_158, %c0_159] : memref<2x32xf32, #tpu.memory_space<vmem>>, vector<2x32xf32>
    tpu.vector_store %arg21[%c0_158, %c0_159], %360 {strides = array<i32>} : memref<2x32xf32, #tpu.memory_space<vmem>>, vector<2x32xf32>,
    %c0_160 = arith.constant 0 : index
    %c0_161 = arith.constant 0 : index
    %366 = vector.load %arg22[%c0_160, %c0_161] : memref<2x32xf32, #tpu.memory_space<vmem>>, vector<2x32xf32>
    tpu.vector_store %arg22[%c0_160, %c0_161], %358 {strides = array<i32>} : memref<2x32xf32, #tpu.memory_space<vmem>>, vector<2x32xf32>,
    %c0_162 = arith.constant 0 : index
    %c0_163 = arith.constant 0 : index
    %c0_164 = arith.constant 0 : index
    %367 = vector.load %arg24[%c0_162, %c0_163, %c0_164] : memref<8x2x32xf32, #tpu.memory_space<vmem>>, vector<8x2x32xf32>
    %368 = tpu.transpose %367, [1, 0, 2] : vector<8x2x32xf32> -> vector<2x8x32xf32>
    %369 = vector.shape_cast %368 : vector<2x8x32xf32> to vector<16x32xf32>
    %c0_165 = arith.constant 0 : index
    %c0_166 = arith.constant 0 : index
    %370 = vector.load %arg25[%c0_165, %c0_166] : memref<16x32xf32, #tpu.memory_space<vmem>>, vector<16x32xf32>
    %371 = arith.truncf %369 : vector<16x32xf32> to vector<16x32xbf16>
    %c0_167 = arith.constant 0 : index
    %c0_168 = arith.constant 0 : index
    %372 = vector.load %arg16[%c0_167, %c0_168] : memref<32x32xbf16, #tpu.memory_space<vmem>>, vector<32x32xbf16>
    %cst_169 = arith.constant dense<0.000000e+00> : vector<16x32xf32>
    %373 = tpu.matmul %371, %372, %cst_169 {dimension_numbers = #tpu.dot_dimension_numbers<[1], [0], [0], [1], [0, 0, 1, 1], [], []>} : vector<16x32xbf16>, vector<32x32xbf16>, vector<16x32xf32> -> vector<16x32xf32>
    %374 = arith.addf %370, %373 : vector<16x32xf32>
    %cst_170 = arith.constant 0.000000e+00 : f32
    %375 = vector.broadcast %cst_170 : f32 to vector<16x32xf32>
    %376 = arith.maximumf %374, %375 : vector<16x32xf32>
    %377 = vector.shape_cast %376 : vector<16x32xf32> to vector<2x8x32xf32>
    %c0_171 = arith.constant 0 : index
    %c0_172 = arith.constant 0 : index
    %378 = vector.load %arg18[%c0_171, %c0_172] : memref<1x32xf32, #tpu.memory_space<vmem>>, vector<1x32xf32>
    %379 = vector.shape_cast %378 : vector<1x32xf32> to vector<1x1x32xf32>
    %380 = vector.broadcast %379 : vector<1x1x32xf32> to vector<2x8x32xf32>
    %381 = arith.mulf %377, %380 : vector<2x8x32xf32>
    %cst_173 = arith.constant dense<0.000000e+00> : vector<2x8xf32>
    %382 = vector.multi_reduction <add>, %381, %cst_173 [2] : vector<2x8x32xf32> to vector<2x8xf32>
    %c0_174 = arith.constant 0 : index
    %c0_175 = arith.constant 0 : index
    %383 = vector.load %arg19[%c0_174, %c0_175] : memref<1x1xf32, #tpu.memory_space<vmem>>, vector<1x1xf32>
    %384 = vector.broadcast %383 : vector<1x1xf32> to vector<2x8xf32>
    %385 = arith.addf %382, %384 : vector<2x8xf32>
    %c0_176 = arith.constant 0 : index
    %c0_177 = arith.constant 0 : index
    %386 = vector.load %arg20[%c0_176, %c0_177] : memref<2x8xf32, #tpu.memory_space<vmem>>, vector<2x8xf32>
    tpu.vector_store %arg20[%c0_176, %c0_177], %385 {strides = array<i32>} : memref<2x8xf32, #tpu.memory_space<vmem>>, vector<2x8xf32>,
    return
  }
  func.func @transform_0(%arg0: i32) -> (i32, i32, i32) {
    %c0_i32 = arith.constant 0 : i32
    %c0_i32_0 = arith.constant 0 : i32
    %c0_i32_1 = arith.constant 0 : i32
    return %arg0, %c0_i32, %c0_i32_0 : i32, i32, i32
  }
  func.func @transform_1(%arg0: i32) -> (i32, i32, i32) {
    %c0_i32 = arith.constant 0 : i32
    %c0_i32_0 = arith.constant 0 : i32
    %c0_i32_1 = arith.constant 0 : i32
    return %arg0, %c0_i32, %c0_i32_0 : i32, i32, i32
  }
  func.func @transform_2(%arg0: i32) -> (i32, i32, i32) {
    %c0_i32 = arith.constant 0 : i32
    %c0_i32_0 = arith.constant 0 : i32
    %c0_i32_1 = arith.constant 0 : i32
    return %arg0, %c0_i32, %c0_i32_0 : i32, i32, i32
  }
  func.func @transform_3(%arg0: i32) -> (i32, i32) {
    %c0_i32 = arith.constant 0 : i32
    %c0_i32_0 = arith.constant 0 : i32
    return %arg0, %c0_i32 : i32, i32
  }
  func.func @transform_4(%arg0: i32) -> (i32, i32) {
    %c0_i32 = arith.constant 0 : i32
    %c0_i32_0 = arith.constant 0 : i32
    return %arg0, %c0_i32 : i32, i32
  }
  func.func @transform_5(%arg0: i32) -> (i32, i32) {
    %c0_i32 = arith.constant 0 : i32
    %c0_i32_0 = arith.constant 0 : i32
    %c0_i32_1 = arith.constant 0 : i32
    return %c0_i32, %c0_i32_0 : i32, i32
  }
  func.func @transform_6(%arg0: i32) -> (i32, i32) {
    %c0_i32 = arith.constant 0 : i32
    %c0_i32_0 = arith.constant 0 : i32
    %c0_i32_1 = arith.constant 0 : i32
    return %c0_i32, %c0_i32_0 : i32, i32
  }
  func.func @transform_7(%arg0: i32) -> (i32, i32) {
    %c0_i32 = arith.constant 0 : i32
    %c0_i32_0 = arith.constant 0 : i32
    %c0_i32_1 = arith.constant 0 : i32
    return %c0_i32, %c0_i32_0 : i32, i32
  }
  func.func @transform_8(%arg0: i32) -> (i32, i32) {
    %c0_i32 = arith.constant 0 : i32
    %c0_i32_0 = arith.constant 0 : i32
    %c0_i32_1 = arith.constant 0 : i32
    return %c0_i32, %c0_i32_0 : i32, i32
  }
  func.func @transform_9(%arg0: i32) -> (i32, i32) {
    %c0_i32 = arith.constant 0 : i32
    %c0_i32_0 = arith.constant 0 : i32
    %c0_i32_1 = arith.constant 0 : i32
    return %c0_i32, %c0_i32_0 : i32, i32
  }
  func.func @transform_10(%arg0: i32) -> (i32, i32) {
    %c0_i32 = arith.constant 0 : i32
    %c0_i32_0 = arith.constant 0 : i32
    %c0_i32_1 = arith.constant 0 : i32
    return %c0_i32, %c0_i32_0 : i32, i32
  }
  func.func @transform_11(%arg0: i32) -> (i32, i32) {
    %c0_i32 = arith.constant 0 : i32
    %c0_i32_0 = arith.constant 0 : i32
    %c0_i32_1 = arith.constant 0 : i32
    return %c0_i32, %c0_i32_0 : i32, i32
  }
  func.func @transform_12(%arg0: i32) -> (i32, i32) {
    %c0_i32 = arith.constant 0 : i32
    %c0_i32_0 = arith.constant 0 : i32
    %c0_i32_1 = arith.constant 0 : i32
    return %c0_i32, %c0_i32_0 : i32, i32
  }
  func.func @transform_13(%arg0: i32) -> (i32, i32) {
    %c0_i32 = arith.constant 0 : i32
    %c0_i32_0 = arith.constant 0 : i32
    %c0_i32_1 = arith.constant 0 : i32
    return %c0_i32, %c0_i32_0 : i32, i32
  }
  func.func @transform_14(%arg0: i32) -> (i32, i32) {
    %c0_i32 = arith.constant 0 : i32
    %c0_i32_0 = arith.constant 0 : i32
    %c0_i32_1 = arith.constant 0 : i32
    return %c0_i32, %c0_i32_0 : i32, i32
  }
  func.func @transform_15(%arg0: i32) -> (i32, i32) {
    %c0_i32 = arith.constant 0 : i32
    %c0_i32_0 = arith.constant 0 : i32
    %c0_i32_1 = arith.constant 0 : i32
    return %c0_i32, %c0_i32_0 : i32, i32
  }
  func.func @transform_16(%arg0: i32) -> (i32, i32) {
    %c0_i32 = arith.constant 0 : i32
    %c0_i32_0 = arith.constant 0 : i32
    %c0_i32_1 = arith.constant 0 : i32
    return %c0_i32, %c0_i32_0 : i32, i32
  }
  func.func @transform_17(%arg0: i32) -> (i32, i32) {
    %c0_i32 = arith.constant 0 : i32
    %c0_i32_0 = arith.constant 0 : i32
    %c0_i32_1 = arith.constant 0 : i32
    return %c0_i32, %c0_i32_0 : i32, i32
  }
  func.func @transform_18(%arg0: i32) -> (i32, i32) {
    %c0_i32 = arith.constant 0 : i32
    %c0_i32_0 = arith.constant 0 : i32
    %c0_i32_1 = arith.constant 0 : i32
    return %c0_i32, %c0_i32_0 : i32, i32
  }
  func.func @transform_19(%arg0: i32) -> (i32, i32) {
    %c0_i32 = arith.constant 0 : i32
    %c0_i32_0 = arith.constant 0 : i32
    return %arg0, %c0_i32 : i32, i32
  }
  func.func @transform_20(%arg0: i32) -> (i32, i32) {
    %c0_i32 = arith.constant 0 : i32
    %c0_i32_0 = arith.constant 0 : i32
    return %arg0, %c0_i32 : i32, i32
  }
  func.func @transform_21(%arg0: i32) -> (i32, i32) {
    %c0_i32 = arith.constant 0 : i32
    %c0_i32_0 = arith.constant 0 : i32
    return %arg0, %c0_i32 : i32, i32
  }
}

</mosaic_0001>

<bundles_post_ra>
// kernel: _qnet_lstm_forward.1
= control target key start
LH: loop header
LB: loop body
LE: loop exit
PB: predicated region body
PF: predicated region fallthrough
CT: control target
= control target key end

     0   :  { %s2728_s0 = inlined_call_operand.vmem [shape: bf16[2,8,16], index: 0, kind: input, shape index: {}]   ;;  %s2729_s1 = inlined_call_operand.vmem [shape: bf16[2,8,4], index: 1, kind: input, shape index: {}]   ;;  %s2730_s2 = inlined_call_operand.vmem [shape: bf16[2,8,4], index: 2, kind: input, shape index: {}]   ;;  %s2731_s3 = inlined_call_operand.vmem [shape: f32[2,32], index: 3, kind: input, shape index: {}]   ;;  %s2732_s4 = inlined_call_operand.vmem [shape: f32[2,32], index: 4, kind: input, shape index: {}]   ;;  %s2733_s5 = inlined_call_operand.hbm [shape: bf16[16,32], index: 5, kind: input, shape index: {}]   ;;  %s2734_s6 = inlined_call_operand.hbm [shape: bf16[4,32], index: 6, kind: input, shape index: {}]   ;;  %s2735_s7 = inlined_call_operand.vmem [shape: f32[1,32], index: 7, kind: input, shape index: {}]   ;;  %s2736_s8 = inlined_call_operand.vmem [shape: bf16[16,32], index: 8, kind: input, shape index: {}]   ;;  %s2737_s9 = inlined_call_operand.hbm [shape: bf16[4,32], index: 9, kind: input, shape index: {}]   ;;  %s2738_s10 = inlined_call_operand.hbm [shape: f32[1,32], index: 10, kind: input, shape index: {}]   ;;  %s2739_s11 = inlined_call_operand.vmem [shape: bf16[32,128], index: 11, kind: input, shape index: {}]   ;;  %s2740_s12 = inlined_call_operand.vmem [shape: f32[32,128], index: 12, kind: input, shape index: {}]   ;;  %s2741_s13 = inlined_call_operand.hbm [shape: f32[1,128], index: 13, kind: input, shape index: {}]   ;;  %s2742_s14 = inlined_call_operand.vmem [shape: bf16[32,32], index: 14, kind: input, shape index: {}]   ;;  %s2743_s15 = inlined_call_operand.vmem [shape: bf16[32,32], index: 15, kind: input, shape index: {}]   ;;  %s2744_s16 = inlined_call_operand.hbm [shape: f32[1,32], index: 16, kind: input, shape index: {}]   ;;  %s2745_s17 = inlined_call_operand.hbm [shape: f32[1,32], index: 17, kind: input, shape index: {}]   ;;  %s2746_s18 = inlined_call_operand.<no memory space> [shape: f32[1,1], index: 18, kind: input, shape index: {}]   ;;  %s2747_s19 = inlined_call_operand.hbm [shape: f32[2,8], index: 19, kind: output, shape index: {0}]   ;;  %s2748_s20 = inlined_call_operand.hbm [shape: f32[2,32], index: 20, kind: output, shape index: {1}]   ;;  %s2749_s21 = inlined_call_operand.hbm [shape: f32[2,32], index: 21, kind: output, shape index: {2}]  }
   0x1   :  { %2751 = sst [smem:[#allocation28_spill]] %s2728_s0  ;;  %v27_v0 = vstv %s2746_s18 }
   0x2   :  { %2752 = sst [smem:[#allocation29_spill]] %s2729_s1  ;;  %28 = vst [vmem:[#allocation5] sm:$0x1] %v27_v0 }
   0x3   :  { %2753 = sst [smem:[#allocation30_spill]] %s2730_s2 }
   0x4   :  { %2754 = sst [smem:[#allocation31_spill]] %s2731_s3 }
   0x5   :  { %2755 = sst [smem:[#allocation32_spill]] %s2732_s4 }
   0x6   :  { %2756 = sst [smem:[#allocation33_spill]] %s2733_s5 }
   0x7   :  { %29 = vsyncpa [#allocation7], 0 }
   0x8   :  { %30 = vsyncpa [#allocation10], 0 }
   0x9   :  { %31 = vsyncpa [#allocation13], 0 }
   0xa   :  { %32 = vsyncpa [#allocation16], 0 }
   0xb   :  { %33 = vsyncpa [#allocation8], 0 }
   0xc   :  { %34 = vsyncpa [#allocation20], 0  ;;  %s2260_s26 = smov [#allocation9]   ;;  %s2261_s3 = smov [#allocation12]  }
   0xd   :  { %s63_s27 = sshll.u32 %s2260_s26, 4  ;;  %s87_s28 = sshll.u32 %s2261_s3, 4  ;;  %s64_s27 = int_to_ptr.vmem [resolvable:$true] %s63_s27  ;;  %s88_s28 = int_to_ptr.vmem [resolvable:$true] %s87_s28 }
   0xe   :  { %s2028_s4 = scalar_lea.hbm %s2734_s6, 32 }
   0xf   :  { %p2029_p0 = scmp.ne.s32.totalorder %s2734_s6, %s2028_s4  ;;  %p2032_p1 = scmp.lt.u32.totalorder %s2028_s4, %s2734_s6 }
  0x11   :  { %p2034_p2 = pnand %p2032_p1, %p2029_p0 }
  0x13   :  { %2037 = shalt.err (!%p2034_p2)
}
  0x14   :  { %s2038_s23 = scalar_lea.vmem %s64_s27, 32  ;;  %p2043_p4 = scmp.lt.s32.totalorder %s64_s27, %s64_s27 }
  0x15   :  { %p2039_p3 = scmp.ne.s32.totalorder %s64_s27, %s2038_s23  ;;  %p2044_p5 = scmp.lt.s32.totalorder %s2038_s23, %s2038_s23 }
  0x17   :  { %p2045_p6 = por %p2044_p5, %p2043_p4 }
  0x19   :  { %p2046_p7 = pnand %p2045_p6, %p2039_p3 }
  0x1b   :  { %2049 = shalt.err (!%p2046_p7)
}
  0x1c   :  { %66 = dma.hbm_to_vmem [thread:$0]  %s2734_s6, 32, %s64_s27, [#allocation10]  }
  0x1d   :  { %s2050_s26 = scalar_lea.hbm %s2738_s10, 16 }
  0x1e   :  { %p2051_p8 = scmp.ne.s32.totalorder %s2738_s10, %s2050_s26  ;;  %p2054_p9 = scmp.lt.u32.totalorder %s2050_s26, %s2738_s10 }
  0x20   :  { %p2056_p10 = pnand %p2054_p9, %p2051_p8 }
  0x22   :  { %2059 = shalt.err (!%p2056_p10)
}
  0x23   :  { %s2060_s30 = scalar_lea.vmem %s88_s28, 16  ;;  %s2064_s5 = scalar_lea.vmem %s88_s28, 32 }
  0x24   :  { %p2061_p11 = scmp.ne.s32.totalorder %s88_s28, %s2060_s30  ;;  %p2065_p12 = scmp.lt.s32.totalorder %s88_s28, %s88_s28 }
  0x25   :  { %p2066_p13 = scmp.lt.s32.totalorder %s2064_s5, %s2060_s30 }
  0x27   :  { %p2067_p0 = por %p2066_p13, %p2065_p12 }
  0x29   :  { %p2068_p1 = pnand %p2067_p0, %p2061_p11 }
  0x2b   :  { %2071 = shalt.err (!%p2068_p1)
}
  0x2c   :  { %90 = dma.hbm_to_vmem [thread:$0]  %s2738_s10, 16, %s88_s28, [#allocation13]  }
  0x2d   :  { %s2262_s18 = smov [#allocation15]   ;;  %s2263_s23 = smov [#allocation6]  }
  0x2e   :  { %s115_s22 = sshll.u32 %s2262_s18, 4  ;;  %s50_s1 = sshll.u32 %s2263_s23, 4  ;;  %s116_s22 = int_to_ptr.vmem [resolvable:$true] %s115_s22  ;;  %s2417_s1 = int_to_ptr.vmem [resolvable:$true] %s50_s1 }
  0x2f   :  { %s2072_s25 = scalar_lea.hbm %s2744_s16, 16 }
  0x30   :  { %p2073_p2 = scmp.ne.s32.totalorder %s2744_s16, %s2072_s25  ;;  %p2076_p3 = scmp.lt.u32.totalorder %s2072_s25, %s2744_s16 }
  0x32   :  { %p2078_p4 = pnand %p2076_p3, %p2073_p2 }
  0x34   :  { %2081 = shalt.err (!%p2078_p4)
}
  0x35   :  { %s2082_s10 = scalar_lea.vmem %s116_s22, 16  ;;  %s2086_s28 = scalar_lea.vmem %s116_s22, 32 }
  0x36   :  { %p2083_p5 = scmp.ne.s32.totalorder %s116_s22, %s2082_s10  ;;  %p2087_p6 = scmp.lt.s32.totalorder %s116_s22, %s116_s22 }
  0x37   :  { %p2088_p7 = scmp.lt.s32.totalorder %s2086_s28, %s2082_s10 }
  0x39   :  { %p2089_p8 = por %p2088_p7, %p2087_p6 }
  0x3b   :  { %p2090_p9 = pnand %p2089_p8, %p2083_p5 }
  0x3d   :  { %2093 = shalt.err (!%p2090_p9)
}
  0x3e   :  { %118 = dma.hbm_to_vmem [thread:$0]  %s2744_s16, 16, %s116_s22, [#allocation16]  }
  0x3f   :  { %s2757_s27 = sld [smem:[#allocation33_spill]] }
  0x45   :  { %s2094_s18 = scalar_lea.hbm %s2757_s27, 128 }
  0x46   :  { %p2095_p10 = scmp.ne.s32.totalorder %s2757_s27, %s2094_s18  ;;  %p2098_p11 = scmp.lt.u32.totalorder %s2094_s18, %s2757_s27 }
  0x48   :  { %p2100_p12 = pnand %p2098_p11, %p2095_p10 }
  0x4a   :  { %2103 = shalt.err (!%p2100_p12)
}
  0x4b   :  { %s2104_s26 = scalar_lea.vmem %s2417_s1, 128  ;;  %p2109_p0 = scmp.lt.s32.totalorder %s2417_s1, %s2417_s1 }
  0x4c   :  { %p2105_p13 = scmp.ne.s32.totalorder %s2417_s1, %s2104_s26  ;;  %p2110_p1 = scmp.lt.s32.totalorder %s2104_s26, %s2104_s26 }
  0x4e   :  { %p2111_p2 = por %p2110_p1, %p2109_p0 }
  0x50   :  { %p2112_p3 = pnand %p2111_p2, %p2105_p13 }
  0x52   :  { %2115 = shalt.err (!%p2112_p3)
}
  0x53   :  { %s2264_s16 = smov 64   ;;  %s2265_s22 = smov 4  }
  0x54   :  { %56 = dma.hbm_to_vmem [thread:$0]  %s2757_s27, 128, %s2417_s1, [#allocation7], %s2264_s16, %s2264_s16, %s2265_s22  }
  0x55   :  { %s2266_s0 = smov [#allocation11]   ;;  %s2267_s28 = smov [#allocation14]  }
  0x56   :  { %s77_s10 = sshll.u32 %s2266_s0, 4  ;;  %s101_s4 = sshll.u32 %s2267_s28, 4  ;;  %s78_s10 = int_to_ptr.vmem [resolvable:$true] %s77_s10  ;;  %s102_s4 = int_to_ptr.vmem [resolvable:$true] %s101_s4 }
  0x57   :  { %s2116_s6 = scalar_lea.hbm %s2737_s9, 32 }
  0x58   :  { %p2117_p4 = scmp.ne.s32.totalorder %s2737_s9, %s2116_s6  ;;  %p2120_p5 = scmp.lt.u32.totalorder %s2116_s6, %s2737_s9 }
  0x5a   :  { %p2122_p6 = pnand %p2120_p5, %p2117_p4 }
  0x5c   :  { %2125 = shalt.err (!%p2122_p6)
}
  0x5d   :  { %s2126_s1 = scalar_lea.vmem %s78_s10, 32  ;;  %p2131_p8 = scmp.lt.s32.totalorder %s78_s10, %s78_s10 }
  0x5e   :  { %p2127_p7 = scmp.ne.s32.totalorder %s78_s10, %s2126_s1  ;;  %p2132_p9 = scmp.lt.s32.totalorder %s2126_s1, %s2126_s1 }
  0x60   :  { %p2133_p10 = por %p2132_p9, %p2131_p8 }
  0x62   :  { %p2134_p11 = pnand %p2133_p10, %p2127_p7 }
  0x64   :  { %2137 = shalt.err (!%p2134_p11)
}
  0x65   :  { %80 = dma.hbm_to_vmem [thread:$0]  %s2737_s9, 32, %s78_s10, [#allocation10]  }
  0x66   :  { %s2138_s3 = scalar_lea.hbm %s2741_s13, 16 }
  0x67   :  { %p2139_p12 = scmp.ne.s32.totalorder %s2741_s13, %s2138_s3  ;;  %p2142_p13 = scmp.lt.u32.totalorder %s2138_s3, %s2741_s13 }
  0x69   :  { %p2144_p0 = pnand %p2142_p13, %p2139_p12 }
  0x6b   :  { %2147 = shalt.err (!%p2144_p0)
}
  0x6c   :  { %s2148_s5 = scalar_lea.vmem %s102_s4, 16  ;;  %s2152_s6 = scalar_lea.vmem %s102_s4, 32 }
  0x6d   :  { %p2149_p1 = scmp.ne.s32.totalorder %s102_s4, %s2148_s5  ;;  %p2153_p2 = scmp.lt.s32.totalorder %s102_s4, %s102_s4 }
  0x6e   :  { %p2154_p3 = scmp.lt.s32.totalorder %s2152_s6, %s2148_s5 }
  0x70   :  { %p2155_p4 = por %p2154_p3, %p2153_p2 }
  0x72   :  { %p2156_p5 = pnand %p2155_p4, %p2149_p1 }
  0x74   :  { %2159 = shalt.err (!%p2156_p5)
}
  0x75   :  { %104 = dma.hbm_to_vmem [thread:$0]  %s2741_s13, 16, %s102_s4, [#allocation13]  }
  0x76   :  { %s2268_s18 = smov [#allocation17]   ;;  %s2160_s1 = scalar_lea.hbm %s2745_s17, 16 }
  0x77   :  { %s125_s23 = sshll.u32 %s2268_s18, 4  ;;  %p2161_p6 = scmp.ne.s32.totalorder %s2745_s17, %s2160_s1  ;;  %s126_s23 = int_to_ptr.vmem [resolvable:$true] %s125_s23 }
  0x78   :  { %p2164_p7 = scmp.lt.u32.totalorder %s2160_s1, %s2745_s17 }
  0x7a   :  { %p2166_p8 = pnand %p2164_p7, %p2161_p6 }
  0x7c   :  { %2169 = shalt.err (!%p2166_p8)
}
  0x7d   :  { %s2170_s3 = scalar_lea.vmem %s126_s23, 16  ;;  %s2174_s13 = scalar_lea.vmem %s126_s23, 32 }
  0x7e   :  { %p2171_p9 = scmp.ne.s32.totalorder %s126_s23, %s2170_s3  ;;  %p2175_p10 = scmp.lt.s32.totalorder %s126_s23, %s126_s23 }
  0x7f   :  { %p2176_p11 = scmp.lt.s32.totalorder %s2174_s13, %s2170_s3 }
  0x81   :  { %p2177_p12 = por %p2176_p11, %p2175_p10 }
  0x83   :  { %p2178_p13 = pnand %p2177_p12, %p2171_p9 }
  0x85   :  { %2181 = shalt.err (!%p2178_p13)
}
  0x86   :  { %128 = dma.hbm_to_vmem [thread:$0]  %s2745_s17, 16, %s126_s23, [#allocation16]  }
  0x87   :  { %2248 = dma.done.wait [#allocation7], 128  }
  0x88   :  { %2249 = vsyncadd [#allocation7], 4294967168 }
  0x89   :  { %2250 = dma.done.wait [#allocation10], 64  }
  0x8a   :  { %2251 = vsyncadd [#allocation10], 4294967232 }
  0x8b   :  { %2252 = dma.done.wait [#allocation13], 32  }
  0x8c   :  { %2253 = vsyncadd [#allocation13], 4294967264 }
  0x8d   :  { %2254 = dma.done.wait [#allocation16], 32  }
  0x8e   :  { %2255 = vsyncadd [#allocation16], 4294967264  ;;  %v2269_v1 = vmov 0.0   ;;  %vm2270_vm0 = vmmov 0   ;;  %vm171_vm1 = vcmask 1041408   ;;  %s2758_s28 = sld [smem:[#allocation29_spill]]  ;;  %v469_v61 = vlaneseq }
  0x8f   :  { %1756 = vmatprep.subr.bf16.mxu1 %v2269_v1  ;;  %1758 = vmatprep.mubr.msk.bf16.mxu1 %vm2270_vm0, %v2269_v1  ;;  %v161_v2 = vld [vmem:[#allocation9] sm:$0x3]  ;;  %vm167_vm2 = vcmask 31744   ;;  %v1962_v5 = vld [vmem:[#allocation6] sm:$0xff]   ;;  %v285_v6 = vld [vmem:[#allocation11] sm:$0x3] }
  0x90   :  { %1768 = vmatprep.subr.bf16.mxu0 %v2269_v1  ;;  %1770 = vmatprep.mubr.msk.bf16.mxu0 %vm2270_vm0, %v2269_v1  ;;  %v173_v3 = vsel %vm171_vm1, %v161_v2, 0  ;;  %v295_v7 = vsel %vm171_vm1, %v285_v6, 0  ;;  %s2759_s6 = sld [smem:[#allocation30_spill]]  ;;  %s2760_s18 = sld [smem:[#allocation28_spill]]  ;;  %vm227_vm3 = vcmask 130048   ;;  %v1964_v10 = vld [vmem:[%s2736_s8] sm:$0xff]  }
  0x91   :  { %1757 = vmatpush3.bf16.msra.mxu1 %v173_v3  ;;  %1769 = vmatpush3.bf16.msra.mxu0 %v295_v7  ;;  %v1966_v11 = vld [vmem:[%s2742_s14] sm:$0xff]   ;;  %v1967_v12 = vld [vmem:[%s2742_s14 + $0x8] sm:$0xff]   ;;  %v2271_v15 = vmov 0.0|0.0   ;;  %v1673_v38 = vld [vmem:[#allocation12] ss:$0 sm:$0xff]  ;;  %vm420_vm4 = vcmask 261120  }
  0x92   :  { %1762 = vmatprep.subr.bf16.mxu1 %v2269_v1  ;;  %1780 = vmatprep.subr.bf16.mxu0 %v2269_v1  ;;  %v1968_v13 = vld [vmem:[%s2739_s11] sm:$0xff]   ;;  %v1969_v14 = vld [vmem:[%s2739_s11 + $0x8] sm:$0xff]   ;;  %v611_v47 = vld [vmem:[%s2740_s12 + $0x10] sm:$0xff]  ;;  %v2272_v59 = vmov 1983009808   ;;  %v2578_v3 = vshrl.u32 %v469_v61, 7 }
  0x93   :  { %v1668_v24 = vld [vmem:[%s2735_s7] ss:$0 sm:$0xff]  ;;  %v610_v36 = vld [vmem:[%s2740_s12 + $0x8] sm:$0xff]  ;;  %v612_v48 = vld [vmem:[%s2740_s12 + $0x18] sm:$0xff]  ;;  %v467_v60 = vunpack.c.l.s4 %v2272_v59  ;;  %s2274_s23 = smov 32   ;;  %vm720_vm5 = vcmask 254976  }
  0x94   :  { %v1961_v4 = vld [vmem:[%s2758_s28] sm:$0xff]   ;;  %v2554_v50 = vpack.c.bf16 %v612_v48, %v611_v47  ;;  %v1674_v6 = vld [vmem:[#allocation14] ss:$0 sm:$0xff] }
  0x95   :  { %1759 = vmatmul.mubr.msk.bf16.vlgmr.msra.gmra.mrb[0].mxu1 %vm167_vm2, %v1961_v4  ;;  %v609_v35 = vld [vmem:[%s2740_s12] sm:$0xff]  ;;  %v468_v2 = vunpack.c.0.s8 %v467_v60  ;;  %v2273_v4 = vmov 1934713408  }
  0x96   :  { %v1965_v8 = vld [vmem:[%s2759_s6] sm:$0xff]   ;;  %1763 = vmatpush3.bf16.msra.mxu1 %v1962_v5  ;;  %1764 = vmatprep.mubr.msk.bf16.mxu1 %vm2270_vm0, %v2269_v1  ;;  %v2541_v43 = vpack.c.bf16 %v610_v36, %v609_v35  ;;  %s2761_s6 = sld [smem:[#allocation31_spill]]  ;;  %v498_v5 = vunpack.c.l.s4 %v2273_v4 }
  0x97   :  { %1774 = vmatprep.subr.bf16.mxu1 %v2269_v1  ;;  %v1963_v9 = vld [vmem:[%s2760_s18] sm:$0xff]   ;;  %1771 = vmatmul.mubr.msk.bf16.vlgmr.msra.gmra.mrb[0].mxu0 %vm167_vm2, %v1965_v8  ;;  %s2762_s18 = sld [smem:[#allocation32_spill]] }
  0x98   :  { %1784 = vmatprep.mubr.msk.bf16.mxu0 %vm2270_vm0, %v2269_v1  ;;  %1781 = vmatpush3.bf16.msra.mxu0 %v1968_v13  ;;  %v1682_v55 = vld [vmem:[#allocation15] ss:$0 sm:$0xff] }
  0x99   :  { %1782 = vmatprep.subr.bf16.mxu0 %v2269_v1 }
  0x9c   :  { %1783 = vmatpush3.bf16.msra.mxu0 %v1969_v14  ;;  %v613_v54 = vld [vmem:[%s2761_s6] sm:$0x3] }
  0x9d   :  { %1765 = vmatmul.mubr.msk.bf16.vlgmr.msra.gmra.mrb[4].mxu1 %vm227_vm3, %v1963_v9  ;;  %1892 = vmatprep.subr.bf16.mxu0 %v2271_v15 }
  0x9e   :  { %1775 = vmatpush3.bf16.msra.mxu1 %v1964_v10  ;;  %1776 = vmatprep.mubr.msk.bf16.mxu1 %vm2270_vm0, %v2269_v1 }
  0x9f   :  { %1788 = vmatprep.subr.bf16.mxu1 %v2269_v1 }
  0xa5   :  { %1777 = vmatmul.mubr.msk.bf16.vlgmr.msra.gmra.mrb[8].mxu1 %vm227_vm3, %v1963_v9  ;;  %v471_v9 = vsub.s32 %v468_v2, %v2578_v3 }
  0xa6   :  { %1792 = vmatprep.mubr.msk.bf16.mxu1 %vm2270_vm0, %v2269_v1  ;;  %1789 = vmatpush3.bf16.msra.mxu1 %v1966_v11  ;;  %v499_v11 = vunpack.c.0.s8 %v498_v5 }
  0xa7   :  { %1790 = vmatprep.subr.bf16.mxu1 %v2269_v1 }
  0xaa   :  { %1791 = vmatpush3.bf16.msra.mxu1 %v1967_v12 }
  0xab   :  { %1898 = vmatprep.subr.bf16.mxu1 %v2271_v15 }
 0x168   :  { %v209_v16 = vpop.f32.mrb[0].mxu1 }
 0x169   :  { %v1760_v17 = vpop.f32.mrb[1].mxu1 }
 0x16a   :  { %v212_v18 = vpop.f32.mrb[2].mxu1  ;;  %v331_v20 = vpop.f32.mrb[0].mxu0 }
 0x16b   :  { %v1761_v19 = vpop.f32.mrb[3].mxu1  ;;  %v1772_v21 = vpop.f32.mrb[1].mxu0 }
 0x16c   :  { %v334_v22 = vpop.f32.mrb[2].mxu0 }
 0x16d   :  { %v1773_v25 = vpop.f32.mrb[3].mxu0 }
 0x170   :  { %v265_v23 = vpop.f32.mrb[4].mxu1 }
 0x171   :  { %v266_v26 = vadd.f32 %v265_v23, %v209_v16  ;;  %v1766_v27 = vpop.f32.mrb[5].mxu1 }
 0x172   :  { %v268_v28 = vpop.f32.mrb[6].mxu1 }
 0x173   :  { %v279_v29 = vadd.f32 %v1668_v24, %v266_v26  ;;  %v269_v30 = vadd.f32 %v268_v28, %v212_v18  ;;  %v1767_v31 = vpop.f32.mrb[7].mxu1 }
 0x175   :  { %v280_v32 = vadd.f32 %v1668_v24, %v269_v30  ;;  %v281_v33 = vmax.f32 %v279_v29, 0.0 }
 0x177   :  { %v282_v34 = vmax.f32 %v280_v32, 0.0 }
 0x178   :  { %v378_v37 = vpop.f32.mrb[8].mxu1 }
 0x179   :  { %v539_v39 = vpack.c.bf16 %v282_v34, %v281_v33  ;;  %v379_v40 = vadd.f32 %v378_v37, %v331_v20  ;;  %v1778_v41 = vpop.f32.mrb[9].mxu1  ;;  %v2584_v20 = vsub.s32 %v499_v11, %v2578_v3 }
 0x17a   :  { %v381_v42 = vpop.f32.mrb[10].mxu1 }
 0x17b   :  { %v392_v44 = vadd.f32 %v1673_v38, %v379_v40  ;;  %v382_v45 = vadd.f32 %v381_v42, %v334_v22  ;;  %v1779_v46 = vpop.f32.mrb[11].mxu1  ;;  %1793 = vmatmul.mubr.msk.bf16.vlgmr.msra.gmra.mrb[12].mxu1 %vm420_vm4, %v539_v39  ;;  %v614_v40 = vld [vmem:[%s2762_s18] sm:$0x3] }
 0x17c   :  { %1900 = vmatpush3.bf16.msra.mxu1 %v2541_v43  ;;  %1815 = vmatprep.mubr.msk.f32.mxu1 %vm2270_vm0, %v2269_v1 }
 0x17d   :  { %v393_v49 = vadd.f32 %v1673_v38, %v382_v45  ;;  %1901 = vmatprep.subr.bf16.mxu1 %v2271_v15  ;;  %v394_v51 = vmax.f32 %v392_v44, 0.0 }
 0x17f   :  { %v395_v52 = vmax.f32 %v393_v49, 0.0 }
 0x180   :  { %1903 = vmatpush3.bf16.msra.mxu1 %v2554_v50 }
 0x181   :  { %v396_v53 = vpack.c.bf16 %v395_v52, %v394_v51  ;;  %1910 = vmatprep.subr.bf16.mxu1 %v2271_v15 }
 0x183   :  { %1785 = vmatmul.mubr.msk.bf16.vlgmr.msra.gmra.mrb[4].mxu0 %vm420_vm4, %v396_v53 }
 0x184   :  { %1894 = vmatpush3.bf16.msra.mxu0 %v2541_v43  ;;  %1804 = vmatprep.mubr.msk.f32.mxu0 %vm2270_vm0, %v2269_v1 }
 0x185   :  { %1895 = vmatprep.subr.bf16.mxu0 %v2271_v15 }
 0x188   :  { %1897 = vmatpush3.bf16.msra.mxu0 %v2554_v50 }
 0x189   :  { %1904 = vmatprep.subr.bf16.mxu0 %v2271_v15 }
 0x18b   :  { %1805 = vmatmul.mubr.msk.f32.vlgmr.msra.gmra.mrb[8].mxu0 %vm420_vm4, %v613_v54 }
 0x18c   :  { %1906 = vmatpush3.bf16.msra.mxu0 %v2541_v43  ;;  %1826 = vmatprep.mubr.msk.f32.mxu0 %vm2270_vm0, %v2269_v1 }
 0x18d   :  { %1907 = vmatprep.subr.bf16.mxu0 %v2271_v15 }
 0x190   :  { %1909 = vmatpush3.bf16.msra.mxu0 %v2554_v50 }
 0x191   :  { %1916 = vmatprep.subr.bf16.mxu0 %v2271_v15 }
 0x24e   :  { %v600_v56 = vpop.f32.mrb[12].mxu1 }
 0x24f   :  { %v601_v57 = vadd.f32 %v1682_v55, %v600_v56  ;;  %v1794_v58 = vpop.f32.mrb[13].mxu1 }
 0x250   :  { %v603_v62 = vpop.f32.mrb[14].mxu1 }
 0x251   :  { %607 = vst.msk [vmem:[#allocation4] sm:$0xff] %vm420_vm4, %v601_v57  ;;  %v604_v63 = vadd.f32 %v1682_v55, %v603_v62  ;;  %v1795_v0 = vpop.f32.mrb[15].mxu1 }
 0x253   :  { %608 = vst.msk [vmem:[#allocation4 + $0x8] sm:$0xff] %vm420_vm4, %v604_v63 }
 0x256   :  { %v458_v7 = vpop.f32.mrb[4].mxu0 }
 0x257   :  { %v459_v8 = vadd.f32 %v1674_v6, %v458_v7  ;;  %v1786_v10 = vpop.f32.mrb[5].mxu0 }
 0x258   :  { %v461_v12 = vpop.f32.mrb[6].mxu0 }
 0x259   :  { %v465_v13 = vcombine.high %v459_v8, %v2269_v1  ;;  %v462_v14 = vadd.f32 %v1674_v6, %v461_v12  ;;  %v1787_v16 = vpop.f32.mrb[7].mxu0  ;;  %v472_v17 = vrot.slane %v459_v8, %v471_v9 }
 0x25b   :  { %v480_v18 = vcombine.high %v462_v14, %v2269_v1  ;;  %v487_v19 = vrot.slane %v462_v14, %v471_v9  ;;  %v479_v21 = vrot.slane %v465_v13, %v471_v9 }
 0x25d   :  { %v494_v22 = vrot.slane %v480_v18, %v471_v9  ;;  %v495_v23 = vcombine.low %v472_v17, %v487_v19  ;;  %v496_v24 = vcombine.high %v472_v17, %v487_v19 }
 0x25e   :  { %v685_v25 = vpop.f32.mrb[8].mxu0 }
 0x25f   :  { %v503_v26 = vrot.slane %v495_v23, %v2584_v20  ;;  %v510_v27 = vrot.slane %v496_v24, %v2584_v20  ;;  %v511_v28 = vcombine.low %v479_v21, %v494_v22  ;;  %v512_v29 = vcombine.high %v479_v21, %v494_v22  ;;  %1678 = vst.sshfl [vmem:[#allocation2] sm:$0x11 pattern:$0x73516240] %v495_v23  ;;  %v1806_v30 = vpop.f32.mrb[9].mxu0 }
 0x260   :  { %1679 = vst.sshfl [vmem:[#allocation2 + $0x4] sm:$0x11 pattern:$0x73516240] %v496_v24 }
 0x261   :  { %v519_v31 = vrot.slane %v511_v28, %v2584_v20  ;;  %v526_v32 = vrot.slane %v512_v29, %v2584_v20  ;;  %v527_v33 = vcombine.high %v503_v26, %v2269_v1  ;;  %v528_v34 = vcombine.high %v510_v27, %v2269_v1  ;;  %1680 = vst.sshfl [vmem:[#allocation2 + $0x8] sm:$0x11 pattern:$0x73516240] %v511_v28 }
 0x262   :  { %1681 = vst.sshfl [vmem:[#allocation2 + $0xc] sm:$0x11 pattern:$0x73516240] %v512_v29 }
 0x263   :  { %v529_v35 = vcombine.high %v519_v31, %v2269_v1  ;;  %v530_v36 = vcombine.high %v526_v32, %v2269_v1  ;;  %532 = vst [vmem:[#allocation2 + $0x2] sm:$0x3] %v527_v33  ;;  %534 = vst [vmem:[#allocation2 + $0x6] sm:$0x3] %v528_v34 }
 0x265   :  { %536 = vst [vmem:[#allocation2 + $0xa] sm:$0x3] %v529_v35  ;;  %538 = vst [vmem:[#allocation2 + $0xe] sm:$0x3] %v530_v36 }
 0x266   :  { %v615_v37 = vld [vmem:[#allocation2] sm:$0x3] }
 0x267   :  { %v689_v38 = vadd.f32 %v685_v25, %v615_v37  ;;  %v826_v14 = vld [vmem:[#allocation2 + $0x4] sm:$0x3] }
 0x269   :  { %1976 = vtanh.f32 %v689_v38  ;;  %v690_v41 = vmul.f32 0.5, %v689_v38 }
 0x26a   :  { %v723_v57 = vld [vmem:[#allocation2 + $0x2] sm:$0x3]  ;;  %v929_v34 = vld [vmem:[#allocation2 + $0x6] sm:$0x3] }
 0x26b   :  { %1978 = vtanh.f32 %v690_v41 }
 0x273   :  { %v1977_v39 = vpop.eup %1976 }
 0x274   :  { %701 = vrot.lane.b32.xlu0 %v1977_v39, %s2264_s16 }
 0x275   :  { %v1979_v42 = vpop.eup %1978 }
 0x276   :  { %v692_v44 = vmul.f32 0.5, %v1979_v42 }
 0x278   :  { %696 = vrot.lane.b32.xlu0 %v614_v40, %s2274_s23  ;;  %v693_v45 = vadd.f32 0.5, %v692_v44 }
 0x2e6   :  { %v702_v46 = vpop.permute.xlu0 %701 }
 0x2e7   :  { %v704_v47 = vmul.f32 %v702_v46, %v693_v45 }
 0x2e9   :  { %706 = vrot.lane.b32.xlu1 %v704_v47, %s2274_s23 }
 0x2ea   :  { %v697_v48 = vpop.permute.xlu0 %696 }
 0x2eb   :  { %v699_v49 = vmul.f32 %v697_v48, %v693_v45 }
 0x35b   :  { %v707_v51 = vpop.permute.xlu1 %706 }
 0x35c   :  { %v709_v52 = vadd.f32 %v707_v51, %v699_v49 }
 0x35e   :  { %1980 = vtanh.f32 %v709_v52 }
 0x368   :  { %v1981_v53 = vpop.eup %1980 }
 0x369   :  { %712 = vrot.lane.b32.xlu1 %v1981_v53, %s2264_s16 }
 0x3db   :  { %v713_v54 = vpop.permute.xlu1 %712 }
 0x3dc   :  { %v715_v55 = vmul.f32 %v713_v54, %v693_v45  ;;  %v1032_v54 = vld [vmem:[#allocation2 + $0x8] sm:$0x3] }
 0x3de   :  { %717 = vrot.lane.b32.xlu0 %v715_v55, %s2274_s23 }
 0x450   :  { %v718_v56 = vpop.permute.xlu0 %717 }
 0x451   :  { %721 = vst.msk [vmem:[#allocation3] sm:$0x3] %vm720_vm5, %v718_v56  ;;  %1816 = vmatmul.mubr.msk.f32.vlgmr.msra.gmra.mrb[16].mxu1 %vm420_vm4, %v718_v56 }
 0x452   :  { %1912 = vmatpush3.bf16.msra.mxu1 %v2541_v43  ;;  %1837 = vmatprep.mubr.msk.f32.mxu1 %vm2270_vm0, %v2269_v1 }
 0x453   :  { %1913 = vmatprep.subr.bf16.mxu1 %v2271_v15 }
 0x456   :  { %1915 = vmatpush3.bf16.msra.mxu1 %v2554_v50 }
 0x457   :  { %1922 = vmatprep.subr.bf16.mxu1 %v2271_v15 }
 0x524   :  { %v792_v58 = vpop.f32.mrb[16].mxu1 }
 0x525   :  { %v796_v59 = vadd.f32 %v792_v58, %v723_v57  ;;  %v1817_v60 = vpop.f32.mrb[17].mxu1 }
 0x527   :  { %1982 = vtanh.f32 %v796_v59  ;;  %v797_v63 = vmul.f32 0.5, %v796_v59 }
 0x529   :  { %1984 = vtanh.f32 %v797_v63 }
 0x531   :  { %v1983_v62 = vpop.eup %1982 }
 0x532   :  { %804 = vrot.lane.b32.xlu1 %v1983_v62, %s2264_s16 }
 0x533   :  { %v1985_v0 = vpop.eup %1984 }
 0x534   :  { %v799_v2 = vmul.f32 0.5, %v1985_v0 }
 0x536   :  { %v800_v4 = vadd.f32 0.5, %v799_v2 }
 0x538   :  { %v802_v7 = vmul.f32 %v800_v4, %v709_v52 }
 0x5a4   :  { %v805_v5 = vpop.permute.xlu1 %804 }
 0x5a5   :  { %v807_v6 = vmul.f32 %v805_v5, %v800_v4 }
 0x5a7   :  { %809 = vrot.lane.b32.xlu0 %v807_v6, %s2274_s23 }
 0x619   :  { %v810_v8 = vpop.permute.xlu0 %809 }
 0x61a   :  { %v812_v9 = vadd.f32 %v810_v8, %v802_v7 }
 0x61c   :  { %1986 = vtanh.f32 %v812_v9 }
 0x626   :  { %v1987_v10 = vpop.eup %1986 }
 0x627   :  { %815 = vrot.lane.b32.xlu1 %v1987_v10, %s2264_s16 }
 0x699   :  { %v816_v11 = vpop.permute.xlu1 %815 }
 0x69a   :  { %v818_v12 = vmul.f32 %v816_v11, %v800_v4  ;;  %v1135_v11 = vld [vmem:[#allocation2 + $0xa] sm:$0x3] }
 0x69c   :  { %820 = vrot.lane.b32.xlu0 %v818_v12, %s2274_s23 }
 0x70e   :  { %v821_v13 = vpop.permute.xlu0 %820 }
 0x70f   :  { %824 = vst.msk [vmem:[#allocation3 + $0x2] sm:$0x3] %vm720_vm5, %v821_v13  ;;  %1827 = vmatmul.mubr.msk.f32.vlgmr.msra.gmra.mrb[10].mxu0 %vm420_vm4, %v821_v13 }
 0x710   :  { %1918 = vmatpush3.bf16.msra.mxu0 %v2541_v43  ;;  %1848 = vmatprep.mubr.msk.f32.mxu0 %vm2270_vm0, %v2269_v1 }
 0x711   :  { %1919 = vmatprep.subr.bf16.mxu0 %v2271_v15 }
 0x714   :  { %1921 = vmatpush3.bf16.msra.mxu0 %v2554_v50 }
 0x715   :  { %1928 = vmatprep.subr.bf16.mxu0 %v2271_v15 }
 0x7e2   :  { %v895_v16 = vpop.f32.mrb[10].mxu0 }
 0x7e3   :  { %v899_v17 = vadd.f32 %v895_v16, %v826_v14  ;;  %v1828_v18 = vpop.f32.mrb[11].mxu0 }
 0x7e5   :  { %1988 = vtanh.f32 %v899_v17  ;;  %v900_v21 = vmul.f32 0.5, %v899_v17 }
 0x7e7   :  { %1990 = vtanh.f32 %v900_v21 }
 0x7ef   :  { %v1989_v19 = vpop.eup %1988 }
 0x7f0   :  { %907 = vrot.lane.b32.xlu1 %v1989_v19, %s2264_s16 }
 0x7f1   :  { %v1991_v22 = vpop.eup %1990 }
 0x7f2   :  { %v902_v23 = vmul.f32 0.5, %v1991_v22 }
 0x7f4   :  { %v903_v24 = vadd.f32 0.5, %v902_v23 }
 0x7f6   :  { %v905_v27 = vmul.f32 %v903_v24, %v812_v9 }
 0x862   :  { %v908_v25 = vpop.permute.xlu1 %907 }
 0x863   :  { %v910_v26 = vmul.f32 %v908_v25, %v903_v24 }
 0x865   :  { %912 = vrot.lane.b32.xlu0 %v910_v26, %s2274_s23 }
 0x8d7   :  { %v913_v28 = vpop.permute.xlu0 %912 }
 0x8d8   :  { %v915_v29 = vadd.f32 %v913_v28, %v905_v27  ;;  %v1238_v28 = vld [vmem:[#allocation2 + $0xc] sm:$0x3] }
 0x8da   :  { %1992 = vtanh.f32 %v915_v29 }
 0x8e4   :  { %v1993_v30 = vpop.eup %1992 }
 0x8e5   :  { %918 = vrot.lane.b32.xlu1 %v1993_v30, %s2264_s16 }
 0x957   :  { %v919_v31 = vpop.permute.xlu1 %918 }
 0x958   :  { %v921_v32 = vmul.f32 %v919_v31, %v903_v24 }
 0x95a   :  { %923 = vrot.lane.b32.xlu0 %v921_v32, %s2274_s23 }
 0x9cc   :  { %v924_v33 = vpop.permute.xlu0 %923 }
 0x9cd   :  { %927 = vst.msk [vmem:[#allocation3 + $0x4] sm:$0x3] %vm720_vm5, %v924_v33  ;;  %1838 = vmatmul.mubr.msk.f32.vlgmr.msra.gmra.mrb[18].mxu1 %vm420_vm4, %v924_v33 }
 0x9ce   :  { %1924 = vmatpush3.bf16.msra.mxu1 %v2541_v43  ;;  %1859 = vmatprep.mubr.msk.f32.mxu1 %vm2270_vm0, %v2269_v1 }
 0x9cf   :  { %1925 = vmatprep.subr.bf16.mxu1 %v2271_v15 }
 0x9d2   :  { %1927 = vmatpush3.bf16.msra.mxu1 %v2554_v50 }
 0x9d3   :  { %1934 = vmatprep.subr.bf16.mxu1 %v2271_v15 }
 0xaa0   :  { %v998_v35 = vpop.f32.mrb[18].mxu1 }
 0xaa1   :  { %v1002_v36 = vadd.f32 %v998_v35, %v929_v34  ;;  %v1839_v37 = vpop.f32.mrb[19].mxu1 }
 0xaa3   :  { %1994 = vtanh.f32 %v1002_v36  ;;  %v1003_v39 = vmul.f32 0.5, %v1002_v36 }
 0xaa5   :  { %1996 = vtanh.f32 %v1003_v39 }
 0xaad   :  { %v1995_v38 = vpop.eup %1994 }
 0xaae   :  { %1010 = vrot.lane.b32.xlu1 %v1995_v38, %s2264_s16 }
 0xaaf   :  { %v1997_v40 = vpop.eup %1996 }
 0xab0   :  { %v1005_v41 = vmul.f32 0.5, %v1997_v40 }
 0xab2   :  { %v1006_v42 = vadd.f32 0.5, %v1005_v41 }
 0xab4   :  { %v1008_v46 = vmul.f32 %v1006_v42, %v915_v29 }
 0xb20   :  { %v1011_v44 = vpop.permute.xlu1 %1010 }
 0xb21   :  { %v1013_v45 = vmul.f32 %v1011_v44, %v1006_v42 }
 0xb23   :  { %1015 = vrot.lane.b32.xlu0 %v1013_v45, %s2274_s23 }
 0xb95   :  { %v1016_v47 = vpop.permute.xlu0 %1015 }
 0xb96   :  { %v1018_v48 = vadd.f32 %v1016_v47, %v1008_v46  ;;  %v1341_v47 = vld [vmem:[#allocation2 + $0xe] sm:$0x3] }
 0xb98   :  { %1998 = vtanh.f32 %v1018_v48 }
 0xba2   :  { %v1999_v49 = vpop.eup %1998 }
 0xba3   :  { %1021 = vrot.lane.b32.xlu1 %v1999_v49, %s2264_s16 }
 0xc15   :  { %v1022_v51 = vpop.permute.xlu1 %1021 }
 0xc16   :  { %v1024_v52 = vmul.f32 %v1022_v51, %v1006_v42 }
 0xc18   :  { %1026 = vrot.lane.b32.xlu0 %v1024_v52, %s2274_s23 }
 0xc8a   :  { %v1027_v53 = vpop.permute.xlu0 %1026 }
 0xc8b   :  { %1030 = vst.msk [vmem:[#allocation3 + $0x6] sm:$0x3] %vm720_vm5, %v1027_v53  ;;  %1849 = vmatmul.mubr.msk.f32.vlgmr.msra.gmra.mrb[12].mxu0 %vm420_vm4, %v1027_v53 }
 0xc8c   :  { %1930 = vmatpush3.bf16.msra.mxu0 %v2541_v43  ;;  %1870 = vmatprep.mubr.msk.f32.mxu0 %vm2270_vm0, %v2269_v1 }
 0xc8d   :  { %1931 = vmatprep.subr.bf16.mxu0 %v2271_v15 }
 0xc90   :  { %1933 = vmatpush3.bf16.msra.mxu0 %v2554_v50 }
 0xc91   :  { %1884 = vmatprep.subr.bf16.mxu0 %v2269_v1 }
 0xd5e   :  { %v1101_v55 = vpop.f32.mrb[12].mxu0 }
 0xd5f   :  { %v1105_v56 = vadd.f32 %v1101_v55, %v1032_v54  ;;  %v1850_v57 = vpop.f32.mrb[13].mxu0 }
 0xd61   :  { %2000 = vtanh.f32 %v1105_v56  ;;  %v1106_v59 = vmul.f32 0.5, %v1105_v56 }
 0xd63   :  { %2002 = vtanh.f32 %v1106_v59 }
 0xd6b   :  { %v2001_v58 = vpop.eup %2000 }
 0xd6c   :  { %1113 = vrot.lane.b32.xlu1 %v2001_v58, %s2264_s16 }
 0xd6d   :  { %v2003_v60 = vpop.eup %2002 }
 0xd6e   :  { %v1108_v62 = vmul.f32 0.5, %v2003_v60 }
 0xd70   :  { %v1109_v63 = vadd.f32 0.5, %v1108_v62 }
 0xd72   :  { %v1111_v4 = vmul.f32 %v1109_v63, %v1018_v48 }
 0xdde   :  { %v1114_v0 = vpop.permute.xlu1 %1113 }
 0xddf   :  { %v1116_v2 = vmul.f32 %v1114_v0, %v1109_v63  ;;  %v1970_v0 = vld [vmem:[%s2743_s15] sm:$0xff]  }
 0xde1   :  { %1118 = vrot.lane.b32.xlu0 %v1116_v2, %s2274_s23  ;;  %v1971_v2 = vld [vmem:[%s2743_s15 + $0x8] sm:$0xff]   ;;  %s2276_s15 = smov 96  }
 0xe53   :  { %v1119_v5 = vpop.permute.xlu0 %1118 }
 0xe54   :  { %v1121_v6 = vadd.f32 %v1119_v5, %v1111_v4 }
 0xe56   :  { %2004 = vtanh.f32 %v1121_v6 }
 0xe60   :  { %v2005_v7 = vpop.eup %2004 }
 0xe61   :  { %1124 = vrot.lane.b32.xlu1 %v2005_v7, %s2264_s16  ;;  %v2024_v7 = vld.sshfl [vmem:[#allocation3 + $0x2] sm:$0xf pattern:$0x76325410] }
 0xed3   :  { %v1125_v8 = vpop.permute.xlu1 %1124 }
 0xed4   :  { %v1127_v9 = vmul.f32 %v1125_v8, %v1109_v63  ;;  %v2025_v8 = vld.sshfl [vmem:[#allocation3] sm:$0xf pattern:$0x76325410] }
 0xed6   :  { %1129 = vrot.lane.b32.xlu0 %v1127_v9, %s2274_s23 }
 0xf48   :  { %v1130_v10 = vpop.permute.xlu0 %1129 }
 0xf49   :  { %1133 = vst.msk [vmem:[#allocation3 + $0x8] sm:$0x3] %vm720_vm5, %v1130_v10  ;;  %1860 = vmatmul.mubr.msk.f32.vlgmr.msra.gmra.mrb[20].mxu1 %vm420_vm4, %v1130_v10 }
 0xf4a   :  { %1936 = vmatpush3.bf16.msra.mxu1 %v2541_v43  ;;  %1881 = vmatprep.mubr.msk.f32.mxu1 %vm2270_vm0, %v2269_v1 }
 0xf4b   :  { %1937 = vmatprep.subr.bf16.mxu1 %v2271_v15 }
 0xf4e   :  { %1939 = vmatpush3.bf16.msra.mxu1 %v2554_v50 }
0x101c   :  { %v1204_v12 = vpop.f32.mrb[20].mxu1 }
0x101d   :  { %v1208_v13 = vadd.f32 %v1204_v12, %v1135_v11  ;;  %v1861_v14 = vpop.f32.mrb[21].mxu1  ;;  %v1489_v11 = vcombine.low %v2025_v8, %v2024_v7 }
0x101f   :  { %2006 = vtanh.f32 %v1208_v13  ;;  %v1209_v17 = vmul.f32 0.5, %v1208_v13  ;;  %v1496_v13 = vrot.slane %v1489_v11, %v2584_v20 }
0x1021   :  { %2008 = vtanh.f32 %v1209_v17 }
0x1029   :  { %v2007_v16 = vpop.eup %2006 }
0x102a   :  { %1216 = vrot.lane.b32.xlu1 %v2007_v16, %s2264_s16 }
0x102b   :  { %v2009_v18 = vpop.eup %2008 }
0x102c   :  { %v1211_v19 = vmul.f32 0.5, %v2009_v18  ;;  %v2275_v18 = vmov 0  }
0x102d   :  { %1960 = vset.pattern.permute.xlu0 %v2275_v18 }
0x102e   :  { %v1212_v43 = vadd.f32 0.5, %v1211_v19  ;;  %v1507_v19 = vld [vmem:[#allocation4] sm:$0xff] }
0x1030   :  { %v1214_v15 = vmul.f32 %v1212_v43, %v1121_v6 }
0x109c   :  { %v1217_v21 = vpop.permute.xlu1 %1216 }
0x109d   :  { %v1219_v22 = vmul.f32 %v1217_v21, %v1212_v43 }
0x109f   :  { %1221 = vrot.lane.b32.xlu0 %v1219_v22, %s2274_s23 }
0x1111   :  { %v1222_v23 = vpop.permute.xlu0 %1221 }
0x1112   :  { %v1224_v50 = vadd.f32 %v1222_v23, %v1214_v15  ;;  %v1508_v15 = vld [vmem:[#allocation4 + $0x8] sm:$0xff] }
0x1114   :  { %2010 = vtanh.f32 %v1224_v50 }
0x111e   :  { %v2011_v24 = vpop.eup %2010 }
0x111f   :  { %1227 = vrot.lane.b32.xlu1 %v2011_v24, %s2264_s16 }
0x1191   :  { %v1228_v25 = vpop.permute.xlu1 %1227 }
0x1192   :  { %v1230_v26 = vmul.f32 %v1228_v25, %v1212_v43 }
0x1194   :  { %1232 = vrot.lane.b32.xlu0 %v1230_v26, %s2274_s23 }
0x1206   :  { %v1233_v27 = vpop.permute.xlu0 %1232 }
0x1207   :  { %1236 = vst.msk [vmem:[#allocation3 + $0xa] sm:$0x3] %vm720_vm5, %v1233_v27  ;;  %1871 = vmatmul.mubr.msk.f32.vlgmr.msra.gmra.mrb[14].mxu0 %vm420_vm4, %v1233_v27 }
0x1208   :  { %1888 = vmatprep.mubr.msk.bf16.mxu0 %vm2270_vm0, %v2269_v1  ;;  %1885 = vmatpush3.bf16.msra.mxu0 %v1970_v0 }
0x1209   :  { %1886 = vmatprep.subr.bf16.mxu0 %v2269_v1 }
0x120c   :  { %1887 = vmatpush3.bf16.msra.mxu0 %v1971_v2 }
0x12da   :  { %v1307_v29 = vpop.f32.mrb[14].mxu0 }
0x12db   :  { %v1311_v30 = vadd.f32 %v1307_v29, %v1238_v28  ;;  %v1872_v31 = vpop.f32.mrb[15].mxu0 }
0x12dc   :  { %v1698_v31 = vld [vmem:[#allocation5] ss:$0 sm:$0xff] }
0x12dd   :  { %2012 = vtanh.f32 %v1311_v30  ;;  %v1312_v33 = vmul.f32 0.5, %v1311_v30 }
0x12df   :  { %2014 = vtanh.f32 %v1312_v33 }
0x12e7   :  { %v2013_v32 = vpop.eup %2012 }
0x12e8   :  { %1319 = vrot.lane.b32.xlu1 %v2013_v32, %s2264_s16 }
0x12e9   :  { %v2015_v34 = vpop.eup %2014 }
0x12ea   :  { %v1314_v35 = vmul.f32 0.5, %v2015_v34 }
0x12ec   :  { %v1315_v36 = vadd.f32 0.5, %v1314_v35 }
0x12ee   :  { %v1317_v39 = vmul.f32 %v1315_v36, %v1224_v50  ;;  %v1697_v50 = vld [vmem:[#allocation17] ss:$0 sm:$0xff] }
0x135a   :  { %v1320_v37 = vpop.permute.xlu1 %1319 }
0x135b   :  { %v1322_v38 = vmul.f32 %v1320_v37, %v1315_v36 }
0x135d   :  { %1324 = vrot.lane.b32.xlu0 %v1322_v38, %s2274_s23 }
0x13cf   :  { %v1325_v40 = vpop.permute.xlu0 %1324 }
0x13d0   :  { %v1327_v41 = vadd.f32 %v1325_v40, %v1317_v39 }
0x13d2   :  { %2016 = vtanh.f32 %v1327_v41 }
0x13dc   :  { %v2017_v42 = vpop.eup %2016 }
0x13dd   :  { %1330 = vrot.lane.b32.xlu1 %v2017_v42, %s2264_s16 }
0x144f   :  { %v1331_v44 = vpop.permute.xlu1 %1330 }
0x1450   :  { %v1333_v45 = vmul.f32 %v1331_v44, %v1315_v36 }
0x1452   :  { %1335 = vrot.lane.b32.xlu0 %v1333_v45, %s2274_s23 }
0x14c4   :  { %v1336_v46 = vpop.permute.xlu0 %1335 }
0x14c5   :  { %1339 = vst.msk [vmem:[#allocation3 + $0xc] sm:$0x3] %vm720_vm5, %v1336_v46  ;;  %1882 = vmatmul.mubr.msk.f32.vlgmr.msra.gmra.mrb[22].mxu1 %vm420_vm4, %v1336_v46 }
0x14cc   :  { %v2026_v9 = vld.sshfl [vmem:[#allocation3 + $0x8] sm:$0xf pattern:$0x76325410] }
0x1598   :  { %v1410_v48 = vpop.f32.mrb[22].mxu1 }
0x1599   :  { %v1414_v49 = vadd.f32 %v1410_v48, %v1341_v47  ;;  %v1883_v51 = vpop.f32.mrb[23].mxu1 }
0x159b   :  { %2018 = vtanh.f32 %v1414_v49  ;;  %v1415_v53 = vmul.f32 0.5, %v1414_v49 }
0x159d   :  { %2020 = vtanh.f32 %v1415_v53 }
0x15a5   :  { %v2019_v52 = vpop.eup %2018 }
0x15a6   :  { %1422 = vrot.lane.b32.xlu1 %v2019_v52, %s2264_s16 }
0x15a7   :  { %v2021_v54 = vpop.eup %2020 }
0x15a8   :  { %v1417_v55 = vmul.f32 0.5, %v2021_v54 }
0x15aa   :  { %v1418_v56 = vadd.f32 0.5, %v1417_v55 }
0x15ac   :  { %v1420_v59 = vmul.f32 %v1418_v56, %v1327_v41 }
0x1618   :  { %v1423_v57 = vpop.permute.xlu1 %1422 }
0x1619   :  { %v1425_v58 = vmul.f32 %v1423_v57, %v1418_v56 }
0x161b   :  { %1427 = vrot.lane.b32.xlu0 %v1425_v58, %s2274_s23 }
0x168d   :  { %v1428_v60 = vpop.permute.xlu0 %1427 }
0x168e   :  { %v1430_v62 = vadd.f32 %v1428_v60, %v1420_v59 }
0x1690   :  { %2022 = vtanh.f32 %v1430_v62 }
0x169a   :  { %v2023_v63 = vpop.eup %2022 }
0x169b   :  { %1433 = vrot.lane.b32.xlu1 %v2023_v63, %s2264_s16  ;;  %s2277_s16 = smov [#allocation19]  }
0x169c   :  { %s1634_s27 = sshll.u32 %s2277_s16, 4  ;;  %s1635_s27 = int_to_ptr.vmem [resolvable:$true] %s1634_s27 }
0x169d   :  { %s2182_s25 = scalar_lea.vmem %s1635_s27, 32  ;;  %p2187_p1 = scmp.lt.s32.totalorder %s1635_s27, %s1635_s27 }
0x169e   :  { %p2183_p0 = scmp.ne.s32.totalorder %s1635_s27, %s2182_s25  ;;  %p2188_p2 = scmp.lt.s32.totalorder %s2182_s25, %s2182_s25 }
0x16a0   :  { %p2189_p3 = por %p2188_p2, %p2187_p1 }
0x16a2   :  { %p2190_p4 = pnand %p2189_p3, %p2183_p0 }
0x170d   :  { %v1434_v4 = vpop.permute.xlu1 %1433 }
0x170e   :  { %v1436_v5 = vmul.f32 %v1434_v4, %v1418_v56 }
0x1710   :  { %1438 = vrot.lane.b32.xlu0 %v1436_v5, %s2274_s23 }
0x1782   :  { %v1439_v6 = vpop.permute.xlu0 %1438 }
0x1783   :  { %1442 = vst.msk [vmem:[#allocation3 + $0xe] sm:$0x3] %vm720_vm5, %v1439_v6  ;;  %1443 = vst.msk [vmem:[#allocation19] sm:$0x3] %vm720_vm5, %v1439_v6 }
0x178a   :  { %v2027_v10 = vld.sshfl [vmem:[#allocation3 + $0xa] sm:$0xf pattern:$0x76325410] }
0x178b   :  { %v1497_v12 = vcombine.low %v2026_v9, %v2027_v10 }
0x178d   :  { %v1504_v1 = vrot.slane %v1497_v12, %v2584_v20 }
0x178f   :  { %v1505_v14 = vcombine.low %v1496_v13, %v1504_v1  ;;  %v1506_v16 = vcombine.high %v1496_v13, %v1504_v1 }
0x1791   :  { %v1509_v17 = vpack.c.bf16 %v1506_v16, %v1505_v14 }
0x1793   :  { %1889 = vmatmul.mubr.msk.bf16.vlgmr.msra.gmra.mrb[16].mxu0 %vm420_vm4, %v1509_v17 }
0x1866   :  { %v1563_v43 = vpop.f32.mrb[16].mxu0 }
0x1867   :  { %v1570_v21 = vadd.f32 %v1563_v43, %v1507_v19  ;;  %v1890_v22 = vpop.f32.mrb[17].mxu0 }
0x1868   :  { %v1566_v23 = vpop.f32.mrb[18].mxu0 }
0x1869   :  { %v1572_v24 = vmax.f32 %v1570_v21, 0.0  ;;  %v1571_v25 = vadd.f32 %v1566_v23, %v1508_v15  ;;  %v1891_v26 = vpop.f32.mrb[19].mxu0 }
0x186b   :  { %v1573_v27 = vmax.f32 %v1571_v25, 0.0  ;;  %v1581_v28 = vmul.f32 %v1697_v50, %v1572_v24 }
0x186d   :  { %v1583_v20 = vsel %vm420_vm4, %v1581_v28, 0.0  ;;  %v1582_v29 = vmul.f32 %v1697_v50, %v1573_v27 }
0x186e   :  { %1584 = vadd.xlane.f32.xlu1 %v1583_v20 }
0x186f   :  { %v1586_v30 = vsel %vm420_vm4, %v1582_v29, 0.0 }
0x1870   :  { %1587 = vadd.xlane.f32.xlu0 %v1586_v30 }
0x187f   :  { %1445 = vrot.lane.b32.xlu1 %v1430_v62, %s2276_s15 }
0x1886   :  { %1596 = vperm.xlu0 %1960, %v1698_v31  }
0x1887   :  { %2193 = shalt.err (!%p2190_p4)
}
0x1888   :  { %s2194_s3 = scalar_lea.hbm %s2748_s20, 32 }
0x1889   :  { %p2195_p5 = scmp.ne.s32.totalorder %s2748_s20, %s2194_s3  ;;  %p2198_p6 = scmp.lt.u32.totalorder %s2194_s3, %s2748_s20 }
0x188b   :  { %p2200_p7 = pnand %p2198_p6, %p2195_p5 }
0x188d   :  { %2203 = shalt.err (!%p2200_p7)
}
0x188e   :  { %1637 = dma.vmem_to_hbm [thread:$0]  %s1635_s27, 32, %s2748_s20, [#allocation20]   ;;  %v1604_v34 = vand.u32 127, %v469_v61 }
0x188f   :  { %s2278_s7 = smov [#allocation21]  }
0x1890   :  { %s1644_s0 = sshll.u32 %s2278_s7, 4  ;;  %s1645_s0 = int_to_ptr.vmem [resolvable:$true] %s1644_s0 }
0x1891   :  { %s2204_s28 = scalar_lea.vmem %s1645_s0, 32  ;;  %p2209_p9 = scmp.lt.s32.totalorder %s1645_s0, %s1645_s0 }
0x1892   :  { %p2205_p8 = scmp.ne.s32.totalorder %s1645_s0, %s2204_s28  ;;  %p2210_p10 = scmp.lt.s32.totalorder %s2204_s28, %s2204_s28 }
0x1894   :  { %p2211_p11 = por %p2210_p10, %p2209_p9 }
0x1896   :  { %p2212_p12 = pnand %p2211_p11, %p2205_p8 }
0x18fb   :  { %v1585_v32 = vpop.xlane.xlu1 %1584 }
0x18fd   :  { %v1588_v35 = vpop.xlane.xlu0 %1587 }
0x18ff   :  { %v1446_v33 = vpop.permute.xlu1 %1445 }
0x1900   :  { %1448 = vst.msk [vmem:[#allocation21] sm:$0x3] %vm720_vm5, %v1446_v33 }
0x1901   :  { %2215 = shalt.err (!%p2212_p12)
}
0x1902   :  { %s2216_s20 = scalar_lea.hbm %s2749_s21, 32 }
0x1903   :  { %p2217_p13 = scmp.ne.s32.totalorder %s2749_s21, %s2216_s20  ;;  %p2220_p0 = scmp.lt.u32.totalorder %s2216_s20, %s2749_s21 }
0x1905   :  { %p2222_p1 = pnand %p2220_p0, %p2217_p13 }
0x1907   :  { %2225 = shalt.err (!%p2222_p1)
}
0x1908   :  { %1647 = dma.vmem_to_hbm [thread:$0]  %s1645_s0, 32, %s2749_s21, [#allocation20]   ;;  %v1607_v61 = vsub.s32 %v1604_v34, %v2578_v3  ;;  %v1597_v36 = vpop.permute.xlu0 %1596  ;;  %vm1613_vm6 = vcmask 1041409   ;;  %vm1616_vm7 = vcmask 58368  }
0x1909   :  { %v1599_v37 = vadd.f32 %v1597_v36, %v1585_v32  ;;  %v1600_v38 = vadd.f32 %v1597_v36, %v1588_v35  ;;  %s2279_s24 = smov [#allocation18]  }
0x190a   :  { %s1624_s2 = sshll.u32 %s2279_s24, 4  ;;  %s1625_s2 = int_to_ptr.vmem [resolvable:$true] %s1624_s2 }
0x190b   :  { %v1608_v39 = vrot.slane %v1599_v37, %v1607_v61  ;;  %v1612_v40 = vrot.slane %v1600_v38, %v1607_v61  ;;  %s2226_s1 = scalar_lea.vmem %s1625_s2, 32  ;;  %p2231_p3 = scmp.lt.s32.totalorder %s1625_s2, %s1625_s2 }
0x190c   :  { %p2227_p2 = scmp.ne.s32.totalorder %s1625_s2, %s2226_s1  ;;  %p2232_p4 = scmp.lt.s32.totalorder %s2226_s1, %s2226_s1 }
0x190d   :  { %v1614_v41 = vsel %vm1613_vm6, %v1612_v40, %v1608_v39 }
0x190e   :  { %1617 = vst.msk [vmem:[#allocation18] sm:$0x3] %vm1616_vm7, %v1614_v41  ;;  %p2233_p5 = por %p2232_p4, %p2231_p3 }
0x1910   :  { %p2234_p6 = pnand %p2233_p5, %p2227_p2 }
0x1912   :  { %2237 = shalt.err (!%p2234_p6)
}
0x1913   :  { %s2238_s15 = scalar_lea.hbm %s2747_s19, 32 }
0x1914   :  { %p2239_p7 = scmp.ne.s32.totalorder %s2747_s19, %s2238_s15  ;;  %p2242_p8 = scmp.lt.u32.totalorder %s2238_s15, %s2747_s19 }
0x1916   :  { %p2244_p9 = pnand %p2242_p8, %p2239_p7 }
0x1918   :  { %2247 = shalt.err (!%p2244_p9)
}
0x1919   :  { %1627 = dma.vmem_to_hbm [thread:$0]  %s1625_s2, 32, %s2747_s19, [#allocation8]  }
0x191a   :  { %2256 = dma.done.wait [#allocation8], 32  }
0x191b   :  { %2257 = vsyncadd [#allocation8], 4294967264 }
0x191c   :  { %2258 = dma.done.wait [#allocation20], 64  }
0x191d   :  { %2259 = vsyncadd [#allocation20], 4294967232 }
0x191e   :  { %1657 = vsyncpa [#allocation7], 1 }
0x191f   :  { %1658 = vsyncpa [#allocation10], 1 }
0x1920   :  { %1659 = vsyncpa [#allocation13], 1 }
0x1921   :  { %1660 = vsyncpa [#allocation16], 1 }
0x1922   :  { %1661 = vsyncpa [#allocation8], 1 }
0x1923   :  { %1662 = vsyncpa [#allocation20], 1 }

</bundles_post_ra>
